<compile_context>
chip_gen: v5e
topology: v5e:2x2
jax: 0.10.0
libtpu: 0.0.40
codegen_flags: <defaults>
</compile_context>

<pallas_src>
import numpy as np
import jax
import jax.numpy as jnp
from jax.experimental import pallas as pl
from jax.experimental.pallas import tpu as pltpu

KSZ = 7
PAD = (KSZ - 1) // 2          # 3
SLOPE = 0.02                  # LeakyReLU negative slope
EPS = 1e-5                    # BatchNorm eps


def make_spatial_gate2_kernel(N, C, H, W, Nb):
    HW = H * W
    L = Nb * HW                # lanes per grid step (Nb samples side by side)
    steps = N // Nb

    def kernel(x_ref, w1a_ref, w1b_ref, w2_ref, b1_ref, mh_ref, mw_ref,
               sc_ref, o_ref):
        x = x_ref[...]                                     # (C, L) f32

        def taps(a, m_ref, stride):
            # 7 shifted+masked copies of `a`, produced lazily one at a time.
            # roll(a, s)[p] == a[p - s], so shift = -d*stride reads a[p + d*stride];
            # out-of-image taps (incl. the circular wrap across samples) are
            # zeroed by the precomputed per-lane mask row.
            for k in range(KSZ):
                d = k - PAD
                if d == 0:
                    yield k, a
                else:
                    r = pltpu.roll(a, (-d * stride) % L, 1)
                    yield k, r * m_ref[k:k + 1, :]

        def conv_cc(a, w_ref, m_ref, stride):
            # C->C separable conv: accumulate 7 per-tap (C,C)@(C,L) MXU dots.
            acc = None
            for k, t in taps(a, m_ref, stride):
                p = jnp.dot(w_ref[k], t, preferred_element_type=jnp.float32)
                acc = p if acc is None else acc + p
            return acc

        def conv_c1(a, w_ref, col0, m_ref, stride):
            # C->1 separable conv: per-channel weighted taps on the VPU, then
            # a single sublane reduce (XLU).
            acc = None
            for k, t in taps(a, m_ref, stride):
                p = w_ref[col0 + k] * t                    # (C,1) * (C,L)
                acc = p if acc is None else acc + p
            return jnp.sum(acc, axis=0, keepdims=True)     # (1, L)

        leaky = lambda v: jnp.where(v >= 0, v, SLOPE * v)

        # Branch A: Conv(7,1) C->C +BN+LReLU, then Conv(1,7) C->1 +BN+LReLU.
        tA = leaky(conv_cc(x, w1a_ref, mh_ref, W) + b1_ref[0])     # (C, L)
        yA = leaky(conv_c1(tA, w2_ref, 0, mw_ref, 1) + sc_ref[0])  # (1, L)

        # Branch B: Conv(1,7) C->C +BN+LReLU, then Conv(7,1) C->1 +BN+LReLU.
        tB = leaky(conv_cc(x, w1b_ref, mw_ref, 1) + b1_ref[1])     # (C, L)
        yB = leaky(conv_c1(tB, w2_ref, KSZ, mh_ref, W) + sc_ref[1])

        # 1x1 conv (2->1) on [yA, yB] + BN (folded) + sigmoid; lane-dense store.
        o_ref[...] = jax.nn.sigmoid(sc_ref[2] * yA + sc_ref[3] * yB + sc_ref[4])

    smem = pl.BlockSpec(memory_space=pltpu.MemorySpace.SMEM)
    const2 = lambda shape: pl.BlockSpec(shape, lambda i: (0, 0))
    const3 = lambda shape: pl.BlockSpec(shape, lambda i: (0, 0, 0))
    return pl.pallas_call(
        kernel,
        out_shape=jax.ShapeDtypeStruct((1, N * HW), jnp.float32),
        grid=(steps,),
        in_specs=[pl.BlockSpec((C, L), lambda i: (0, i)),        # x: Nb samples/step
                  const3((KSZ, C, C)), const3((KSZ, C, C)),      # W1A, W1B (BN folded)
                  const3((2 * KSZ, C, 1)),                       # W2A|W2B  (BN folded)
                  const3((2, C, 1)),                             # conv-1 BN biases
                  const2((KSZ, L)), const2((KSZ, L)),            # H / W boundary masks
                  smem],                                         # 5 leftover scalars
        out_specs=pl.BlockSpec((1, L), lambda i: (0, i)),        # lane-dense output
        compiler_params=pltpu.CompilerParams(
            dimension_semantics=("parallel",),
            vmem_limit_bytes=64 * 1024 * 1024),
    )


def _pick_nb(N, C, HW):
    """Samples folded per grid step (laid out along the lane axis).

    Prefer >=2 grid steps (v7x megacore) with lane-dense (128-divisible)
    per-step blocks; grow toward ~2 MiB of activations per step.  Fallback is
    a single step whose blocks equal the full arrays (always legal).
    """
    budget = 2 << 20
    cands = [d for d in range(1, N + 1)
             if N % d == 0
             and (d * HW) % 128 == 0
             and N // d >= 2
             and d * HW * C * 4 <= budget]
    if cands:
        return max(cands)
    return N


def init_params(key, C):
    """Deterministic synthetic parameters matching SpatialGate2.__init__ shapes."""
    ks = list(jax.random.split(key, 25))

    def conv_w(k, shape, fan_in):
        bound = 1.0 / np.sqrt(fan_in)
        return jax.random.uniform(k, shape, jnp.float32, -bound, bound)

    def bn(k0, k1, k2, k3, n):
        gamma = 1.0 + 0.1 * jax.random.normal(k0, (n,), jnp.float32)
        beta = 0.1 * jax.random.normal(k1, (n,), jnp.float32)
        mean = 0.1 * jax.random.normal(k2, (n,), jnp.float32)
        var = 0.5 + jnp.abs(jax.random.normal(k3, (n,), jnp.float32))
        a = gamma / jnp.sqrt(var + EPS)          # fold BN (eval) into affine
        b = beta - mean * a
        return a, b

    p = {}
    p['w1a'] = conv_w(ks[0], (C, C, KSZ, 1), C * KSZ)   # spatial_e[0].conv
    p['w2a'] = conv_w(ks[1], (1, C, 1, KSZ), C * KSZ)   # spatial_e[1].conv
    p['w1b'] = conv_w(ks[2], (C, C, 1, KSZ), C * KSZ)   # spatial_e2[0].conv
    p['w2b'] = conv_w(ks[3], (1, C, KSZ, 1), C * KSZ)   # spatial_e2[1].conv
    p['wsp'] = conv_w(ks[4], (1, 2, 1, 1), 2)           # spatial.conv (1x1)
    p['a1a'], p['b1a'] = bn(*ks[5:9], C)
    p['a2a'], p['b2a'] = bn(*ks[9:13], 1)
    p['a1b'], p['b1b'] = bn(*ks[13:17], C)
    p['a2b'], p['b2b'] = bn(*ks[17:21], 1)
    p['asp'], p['bsp'] = bn(*ks[21:25], 1)
    return p


def reference_forward(x, p):
    """Pure-JAX reference mirroring the PyTorch module (eval-mode BN)."""
    def conv(x, w, pad):
        return jax.lax.conv_general_dilated(
            x, w, window_strides=(1, 1),
            padding=((pad[0], pad[0]), (pad[1], pad[1])),
            dimension_numbers=('NCHW', 'OIHW', 'NCHW'),
            precision=jax.lax.Precision.HIGHEST)

    def block(x, w, a, b, pad, relu=True):
        y = conv(x, w, pad)
        y = a.reshape(1, -1, 1, 1) * y + b.reshape(1, -1, 1, 1)
        return jnp.where(y >= 0, y, SLOPE * y) if relu else y

    s1 = block(block(x, p['w1a'], p['a1a'], p['b1a'], (PAD, 0)),
               p['w2a'], p['a2a'], p['b2a'], (0, PAD))
    s2 = block(block(x, p['w1b'], p['a1b'], p['b1b'], (0, PAD)),
               p['w2b'], p['a2b'], p['b2b'], (PAD, 0))
    feat = jnp.concatenate([s1, s2], axis=1)
    z = block(feat, p['wsp'], p['asp'], p['bsp'], (0, 0), relu=False)
    return jax.nn.sigmoid(z)


def spatial_gate2(x, p):
    N, C, H, W = x.shape
    HW = H * W
    Nb = _pick_nb(N, C, HW)

    # Shared per-tap conv weights with the eval-mode BN scale folded in.
    w1a = p['w1a'].reshape(C, C, KSZ) * p['a1a'][:, None, None]   # taps along H
    w1b = p['w1b'].reshape(C, C, KSZ) * p['a1b'][:, None, None]   # taps along W
    W1A = jnp.transpose(w1a, (2, 0, 1))                           # (KSZ, Cout, Cin)
    W1B = jnp.transpose(w1b, (2, 0, 1))

    w2a = p['w2a'].reshape(C, KSZ) * p['a2a'][0]                  # taps along W
    w2b = p['w2b'].reshape(C, KSZ) * p['a2b'][0]                  # taps along H
    W2 = jnp.concatenate([jnp.transpose(w2a, (1, 0))[:, :, None],
                          jnp.transpose(w2b, (1, 0))[:, :, None]],
                         axis=0)                                  # (2*KSZ, C, 1)

    B1 = jnp.stack([p['b1a'], p['b1b']], axis=0)[:, :, None]      # (2, C, 1)

    wsp = p['wsp'].reshape(2)
    sc = jnp.stack([p['b2a'][0], p['b2b'][0],
                    p['asp'][0] * wsp[0], p['asp'][0] * wsp[1],
                    p['bsp'][0]]).astype(jnp.float32)

    # Host-precomputed boundary masks for the roll-based taps, tiled per sample.
    pos = jnp.arange(HW, dtype=jnp.int32)
    hh, ww = pos // W, pos % W
    mh = jnp.stack([(hh + (k - PAD) >= 0) & (hh + (k - PAD) < H) for k in range(KSZ)])
    mw = jnp.stack([(ww + (k - PAD) >= 0) & (ww + (k - PAD) < W) for k in range(KSZ)])
    MH = jnp.tile(mh.astype(jnp.float32), (1, Nb))                # (KSZ, Nb*HW)
    MW = jnp.tile(mw.astype(jnp.float32), (1, Nb))

    # Channels on sublanes, (sample, spatial) on lanes: (C, N*HW).
    x2 = jnp.transpose(x, (1, 0, 2, 3)).reshape(C, N * HW).astype(jnp.float32)

    call = make_spatial_gate2_kernel(N, C, H, W, Nb)
    out = call(x2,
               W1A.astype(jnp.float32), W1B.astype(jnp.float32),
               W2.astype(jnp.float32), B1.astype(jnp.float32),
               MH, MW, sc)
    return out.reshape(N, 1, H, W)


if __name__ == "__main__":
    N, C, H, W = 2, 4, 16, 16
    key = jax.random.PRNGKey(0)
    kx, kp = jax.random.split(key)
    x = jax.random.normal(kx, (N, C, H, W), jnp.float32)
    params = init_params(kp, C)

    out = jax.block_until_ready(spatial_gate2(x, params))
    ref = jax.block_until_ready(reference_forward(x, params))

    assert out.shape == (N, 1, H, W), out.shape
    # Kernel matmuls use default (fast) MXU precision per the perf review;
    # tolerance covers bf16-pass rounding vs the HIGHEST-precision reference.
    np.testing.assert_allclose(np.asarray(out), np.asarray(ref), rtol=1e-2, atol=1e-2)
    print("KERNEL_OK")
</pallas_src>

<mosaic_0001>
module attributes {stable_mosaic.version = 11 : i64} {
  func.func @kernel(%arg0: i32, %arg1: memref<4x256xf32, #tpu.memory_space<vmem>>, %arg2: memref<7x4x4xf32, #tpu.memory_space<vmem>>, %arg3: memref<7x4x4xf32, #tpu.memory_space<vmem>>, %arg4: memref<14x4x1xf32, #tpu.memory_space<vmem>>, %arg5: memref<2x4x1xf32, #tpu.memory_space<vmem>>, %arg6: memref<7x256xf32, #tpu.memory_space<vmem>>, %arg7: memref<7x256xf32, #tpu.memory_space<vmem>>, %arg8: memref<5xf32, #tpu.memory_space<smem>>, %arg9: memref<1x256xf32, #tpu.memory_space<vmem>>) attributes {dimension_semantics = [#tpu.dimension_semantics<parallel>], iteration_bounds = array<i64: 2>, scalar_prefetch = 0 : i64, scratch_operands = 0 : i64, tpu.core_type = #tpu.core_type<tc>, window_params = [{transform_indices = @transform_0, window_bounds = array<i64: 4, 256>}, {pipeline_mode = #tpu.pipeline_mode<synchronous>, transform_indices = @transform_1, window_bounds = array<i64: 7, 4, 4>}, {pipeline_mode = #tpu.pipeline_mode<synchronous>, transform_indices = @transform_2, window_bounds = array<i64: 7, 4, 4>}, {pipeline_mode = #tpu.pipeline_mode<synchronous>, transform_indices = @transform_3, window_bounds = array<i64: 14, 4, 1>}, {pipeline_mode = #tpu.pipeline_mode<synchronous>, transform_indices = @transform_4, window_bounds = array<i64: 2, 4, 1>}, {pipeline_mode = #tpu.pipeline_mode<synchronous>, transform_indices = @transform_5, window_bounds = array<i64: 7, 256>}, {pipeline_mode = #tpu.pipeline_mode<synchronous>, transform_indices = @transform_6, window_bounds = array<i64: 7, 256>}, {transform_indices = @transform_7, window_bounds = array<i64: 5>}, {transform_indices = @transform_8, window_bounds = array<i64: 1, 256>}]} {
    %c0 = arith.constant 0 : index
    %c0_0 = arith.constant 0 : index
    %0 = vector.load %arg1[%c0, %c0_0] : memref<4x256xf32, #tpu.memory_space<vmem>>, vector<4x256xf32>
    %c48_i32 = arith.constant 48 : i32
    %1 = tpu.dynamic_rotate %0 by %c48_i32 dim 1 : vector<4x256xf32>, i32 -> vector<4x256xf32>
    %c0_1 = arith.constant 0 : index
    %c0_2 = arith.constant 0 : index
    %2 = vector.load %arg6[%c0_1, %c0_2] : memref<7x256xf32, #tpu.memory_space<vmem>>, vector<1x256xf32>
    %3 = vector.broadcast %2 : vector<1x256xf32> to vector<4x256xf32>
    %4 = arith.mulf %1, %3 : vector<4x256xf32>
    %c0_3 = arith.constant 0 : index
    %c0_4 = arith.constant 0 : index
    %c0_5 = arith.constant 0 : index
    %5 = vector.load %arg2[%c0_3, %c0_4, %c0_5] : memref<7x4x4xf32, #tpu.memory_space<vmem>>, vector<1x4x4xf32>
    %6 = vector.shape_cast %5 : vector<1x4x4xf32> to vector<4x4xf32>
    %cst = arith.constant dense<0.000000e+00> : vector<4x256xf32>
    %7 = tpu.matmul %6, %4, %cst {dimension_numbers = #tpu.dot_dimension_numbers<[1], [0], [0], [1], [0, 0, 1, 1], [], []>} : vector<4x4xf32>, vector<4x256xf32>, vector<4x256xf32> -> vector<4x256xf32>
    %c32_i32 = arith.constant 32 : i32
    %8 = tpu.dynamic_rotate %0 by %c32_i32 dim 1 : vector<4x256xf32>, i32 -> vector<4x256xf32>
    %c1 = arith.constant 1 : index
    %c0_6 = arith.constant 0 : index
    %9 = vector.load %arg6[%c1, %c0_6] : memref<7x256xf32, #tpu.memory_space<vmem>>, vector<1x256xf32>
    %10 = vector.broadcast %9 : vector<1x256xf32> to vector<4x256xf32>
    %11 = arith.mulf %8, %10 : vector<4x256xf32>
    %c1_7 = arith.constant 1 : index
    %c0_8 = arith.constant 0 : index
    %c0_9 = arith.constant 0 : index
    %12 = vector.load %arg2[%c1_7, %c0_8, %c0_9] : memref<7x4x4xf32, #tpu.memory_space<vmem>>, vector<1x4x4xf32>
    %13 = vector.shape_cast %12 : vector<1x4x4xf32> to vector<4x4xf32>
    %cst_10 = arith.constant dense<0.000000e+00> : vector<4x256xf32>
    %14 = tpu.matmul %13, %11, %cst_10 {dimension_numbers = #tpu.dot_dimension_numbers<[1], [0], [0], [1], [0, 0, 1, 1], [], []>} : vector<4x4xf32>, vector<4x256xf32>, vector<4x256xf32> -> vector<4x256xf32>
    %15 = arith.addf %7, %14 : vector<4x256xf32>
    %c16_i32 = arith.constant 16 : i32
    %16 = tpu.dynamic_rotate %0 by %c16_i32 dim 1 : vector<4x256xf32>, i32 -> vector<4x256xf32>
    %c2 = arith.constant 2 : index
    %c0_11 = arith.constant 0 : index
    %17 = vector.load %arg6[%c2, %c0_11] : memref<7x256xf32, #tpu.memory_space<vmem>>, vector<1x256xf32>
    %18 = vector.broadcast %17 : vector<1x256xf32> to vector<4x256xf32>
    %19 = arith.mulf %16, %18 : vector<4x256xf32>
    %c2_12 = arith.constant 2 : index
    %c0_13 = arith.constant 0 : index
    %c0_14 = arith.constant 0 : index
    %20 = vector.load %arg2[%c2_12, %c0_13, %c0_14] : memref<7x4x4xf32, #tpu.memory_space<vmem>>, vector<1x4x4xf32>
    %21 = vector.shape_cast %20 : vector<1x4x4xf32> to vector<4x4xf32>
    %cst_15 = arith.constant dense<0.000000e+00> : vector<4x256xf32>
    %22 = tpu.matmul %21, %19, %cst_15 {dimension_numbers = #tpu.dot_dimension_numbers<[1], [0], [0], [1], [0, 0, 1, 1], [], []>} : vector<4x4xf32>, vector<4x256xf32>, vector<4x256xf32> -> vector<4x256xf32>
    %23 = arith.addf %15, %22 : vector<4x256xf32>
    %c3 = arith.constant 3 : index
    %c0_16 = arith.constant 0 : index
    %c0_17 = arith.constant 0 : index
    %24 = vector.load %arg2[%c3, %c0_16, %c0_17] : memref<7x4x4xf32, #tpu.memory_space<vmem>>, vector<1x4x4xf32>
    %25 = vector.shape_cast %24 : vector<1x4x4xf32> to vector<4x4xf32>
    %cst_18 = arith.constant dense<0.000000e+00> : vector<4x256xf32>
    %26 = tpu.matmul %25, %0, %cst_18 {dimension_numbers = #tpu.dot_dimension_numbers<[1], [0], [0], [1], [0, 0, 1, 1], [], []>} : vector<4x4xf32>, vector<4x256xf32>, vector<4x256xf32> -> vector<4x256xf32>
    %27 = arith.addf %23, %26 : vector<4x256xf32>
    %c240_i32 = arith.constant 240 : i32
    %28 = tpu.dynamic_rotate %0 by %c240_i32 dim 1 : vector<4x256xf32>, i32 -> vector<4x256xf32>
    %c4 = arith.constant 4 : index
    %c0_19 = arith.constant 0 : index
    %29 = vector.load %arg6[%c4, %c0_19] : memref<7x256xf32, #tpu.memory_space<vmem>>, vector<1x256xf32>
    %30 = vector.broadcast %29 : vector<1x256xf32> to vector<4x256xf32>
    %31 = arith.mulf %28, %30 : vector<4x256xf32>
    %c4_20 = arith.constant 4 : index
    %c0_21 = arith.constant 0 : index
    %c0_22 = arith.constant 0 : index
    %32 = vector.load %arg2[%c4_20, %c0_21, %c0_22] : memref<7x4x4xf32, #tpu.memory_space<vmem>>, vector<1x4x4xf32>
    %33 = vector.shape_cast %32 : vector<1x4x4xf32> to vector<4x4xf32>
    %cst_23 = arith.constant dense<0.000000e+00> : vector<4x256xf32>
    %34 = tpu.matmul %33, %31, %cst_23 {dimension_numbers = #tpu.dot_dimension_numbers<[1], [0], [0], [1], [0, 0, 1, 1], [], []>} : vector<4x4xf32>, vector<4x256xf32>, vector<4x256xf32> -> vector<4x256xf32>
    %35 = arith.addf %27, %34 : vector<4x256xf32>
    %c224_i32 = arith.constant 224 : i32
    %36 = tpu.dynamic_rotate %0 by %c224_i32 dim 1 : vector<4x256xf32>, i32 -> vector<4x256xf32>
    %c5 = arith.constant 5 : index
    %c0_24 = arith.constant 0 : index
    %37 = vector.load %arg6[%c5, %c0_24] : memref<7x256xf32, #tpu.memory_space<vmem>>, vector<1x256xf32>
    %38 = vector.broadcast %37 : vector<1x256xf32> to vector<4x256xf32>
    %39 = arith.mulf %36, %38 : vector<4x256xf32>
    %c5_25 = arith.constant 5 : index
    %c0_26 = arith.constant 0 : index
    %c0_27 = arith.constant 0 : index
    %40 = vector.load %arg2[%c5_25, %c0_26, %c0_27] : memref<7x4x4xf32, #tpu.memory_space<vmem>>, vector<1x4x4xf32>
    %41 = vector.shape_cast %40 : vector<1x4x4xf32> to vector<4x4xf32>
    %cst_28 = arith.constant dense<0.000000e+00> : vector<4x256xf32>
    %42 = tpu.matmul %41, %39, %cst_28 {dimension_numbers = #tpu.dot_dimension_numbers<[1], [0], [0], [1], [0, 0, 1, 1], [], []>} : vector<4x4xf32>, vector<4x256xf32>, vector<4x256xf32> -> vector<4x256xf32>
    %43 = arith.addf %35, %42 : vector<4x256xf32>
    %c208_i32 = arith.constant 208 : i32
    %44 = tpu.dynamic_rotate %0 by %c208_i32 dim 1 : vector<4x256xf32>, i32 -> vector<4x256xf32>
    %c6 = arith.constant 6 : index
    %c0_29 = arith.constant 0 : index
    %45 = vector.load %arg6[%c6, %c0_29] : memref<7x256xf32, #tpu.memory_space<vmem>>, vector<1x256xf32>
    %46 = vector.broadcast %45 : vector<1x256xf32> to vector<4x256xf32>
    %47 = arith.mulf %44, %46 : vector<4x256xf32>
    %c6_30 = arith.constant 6 : index
    %c0_31 = arith.constant 0 : index
    %c0_32 = arith.constant 0 : index
    %48 = vector.load %arg2[%c6_30, %c0_31, %c0_32] : memref<7x4x4xf32, #tpu.memory_space<vmem>>, vector<1x4x4xf32>
    %49 = vector.shape_cast %48 : vector<1x4x4xf32> to vector<4x4xf32>
    %cst_33 = arith.constant dense<0.000000e+00> : vector<4x256xf32>
    %50 = tpu.matmul %49, %47, %cst_33 {dimension_numbers = #tpu.dot_dimension_numbers<[1], [0], [0], [1], [0, 0, 1, 1], [], []>} : vector<4x4xf32>, vector<4x256xf32>, vector<4x256xf32> -> vector<4x256xf32>
    %51 = arith.addf %43, %50 : vector<4x256xf32>
    %c0_34 = arith.constant 0 : index
    %c0_35 = arith.constant 0 : index
    %c0_36 = arith.constant 0 : index
    %52 = vector.load %arg5[%c0_34, %c0_35, %c0_36] : memref<2x4x1xf32, #tpu.memory_space<vmem>>, vector<1x4x1xf32>
    %53 = vector.shape_cast %52 : vector<1x4x1xf32> to vector<4x1xf32>
    %54 = vector.broadcast %53 : vector<4x1xf32> to vector<4x256xf32>
    %55 = arith.addf %51, %54 : vector<4x256xf32>
    %cst_37 = arith.constant 0.000000e+00 : f32
    %56 = vector.broadcast %cst_37 : f32 to vector<4x256xf32>
    %57 = arith.cmpf oge, %55, %56 : vector<4x256xf32>
    %cst_38 = arith.constant 2.000000e-02 : f32
    %58 = vector.broadcast %cst_38 : f32 to vector<4x256xf32>
    %59 = arith.mulf %58, %55 : vector<4x256xf32>
    %60 = arith.select %57, %55, %59 : vector<4x256xi1>, vector<4x256xf32>
    %c3_i32 = arith.constant 3 : i32
    %61 = tpu.dynamic_rotate %60 by %c3_i32 dim 1 : vector<4x256xf32>, i32 -> vector<4x256xf32>
    %c0_39 = arith.constant 0 : index
    %c0_40 = arith.constant 0 : index
    %62 = vector.load %arg7[%c0_39, %c0_40] : memref<7x256xf32, #tpu.memory_space<vmem>>, vector<1x256xf32>
    %63 = vector.broadcast %62 : vector<1x256xf32> to vector<4x256xf32>
    %64 = arith.mulf %61, %63 : vector<4x256xf32>
    %c0_41 = arith.constant 0 : index
    %c0_42 = arith.constant 0 : index
    %c0_43 = arith.constant 0 : index
    %65 = vector.load %arg4[%c0_41, %c0_42, %c0_43] : memref<14x4x1xf32, #tpu.memory_space<vmem>>, vector<1x4x1xf32>
    %66 = vector.shape_cast %65 : vector<1x4x1xf32> to vector<4x1xf32>
    %67 = vector.broadcast %66 : vector<4x1xf32> to vector<4x256xf32>
    %68 = arith.mulf %67, %64 : vector<4x256xf32>
    %c2_i32 = arith.constant 2 : i32
    %69 = tpu.dynamic_rotate %60 by %c2_i32 dim 1 : vector<4x256xf32>, i32 -> vector<4x256xf32>
    %c1_44 = arith.constant 1 : index
    %c0_45 = arith.constant 0 : index
    %70 = vector.load %arg7[%c1_44, %c0_45] : memref<7x256xf32, #tpu.memory_space<vmem>>, vector<1x256xf32>
    %71 = vector.broadcast %70 : vector<1x256xf32> to vector<4x256xf32>
    %72 = arith.mulf %69, %71 : vector<4x256xf32>
    %c1_46 = arith.constant 1 : index
    %c0_47 = arith.constant 0 : index
    %c0_48 = arith.constant 0 : index
    %73 = vector.load %arg4[%c1_46, %c0_47, %c0_48] : memref<14x4x1xf32, #tpu.memory_space<vmem>>, vector<1x4x1xf32>
    %74 = vector.shape_cast %73 : vector<1x4x1xf32> to vector<4x1xf32>
    %75 = vector.broadcast %74 : vector<4x1xf32> to vector<4x256xf32>
    %76 = arith.mulf %75, %72 : vector<4x256xf32>
    %77 = arith.addf %68, %76 : vector<4x256xf32>
    %c1_i32 = arith.constant 1 : i32
    %78 = tpu.dynamic_rotate %60 by %c1_i32 dim 1 : vector<4x256xf32>, i32 -> vector<4x256xf32>
    %c2_49 = arith.constant 2 : index
    %c0_50 = arith.constant 0 : index
    %79 = vector.load %arg7[%c2_49, %c0_50] : memref<7x256xf32, #tpu.memory_space<vmem>>, vector<1x256xf32>
    %80 = vector.broadcast %79 : vector<1x256xf32> to vector<4x256xf32>
    %81 = arith.mulf %78, %80 : vector<4x256xf32>
    %c2_51 = arith.constant 2 : index
    %c0_52 = arith.constant 0 : index
    %c0_53 = arith.constant 0 : index
    %82 = vector.load %arg4[%c2_51, %c0_52, %c0_53] : memref<14x4x1xf32, #tpu.memory_space<vmem>>, vector<1x4x1xf32>
    %83 = vector.shape_cast %82 : vector<1x4x1xf32> to vector<4x1xf32>
    %84 = vector.broadcast %83 : vector<4x1xf32> to vector<4x256xf32>
    %85 = arith.mulf %84, %81 : vector<4x256xf32>
    %86 = arith.addf %77, %85 : vector<4x256xf32>
    %c3_54 = arith.constant 3 : index
    %c0_55 = arith.constant 0 : index
    %c0_56 = arith.constant 0 : index
    %87 = vector.load %arg4[%c3_54, %c0_55, %c0_56] : memref<14x4x1xf32, #tpu.memory_space<vmem>>, vector<1x4x1xf32>
    %88 = vector.shape_cast %87 : vector<1x4x1xf32> to vector<4x1xf32>
    %89 = vector.broadcast %88 : vector<4x1xf32> to vector<4x256xf32>
    %90 = arith.mulf %89, %60 : vector<4x256xf32>
    %91 = arith.addf %86, %90 : vector<4x256xf32>
    %c255_i32 = arith.constant 255 : i32
    %92 = tpu.dynamic_rotate %60 by %c255_i32 dim 1 : vector<4x256xf32>, i32 -> vector<4x256xf32>
    %c4_57 = arith.constant 4 : index
    %c0_58 = arith.constant 0 : index
    %93 = vector.load %arg7[%c4_57, %c0_58] : memref<7x256xf32, #tpu.memory_space<vmem>>, vector<1x256xf32>
    %94 = vector.broadcast %93 : vector<1x256xf32> to vector<4x256xf32>
    %95 = arith.mulf %92, %94 : vector<4x256xf32>
    %c4_59 = arith.constant 4 : index
    %c0_60 = arith.constant 0 : index
    %c0_61 = arith.constant 0 : index
    %96 = vector.load %arg4[%c4_59, %c0_60, %c0_61] : memref<14x4x1xf32, #tpu.memory_space<vmem>>, vector<1x4x1xf32>
    %97 = vector.shape_cast %96 : vector<1x4x1xf32> to vector<4x1xf32>
    %98 = vector.broadcast %97 : vector<4x1xf32> to vector<4x256xf32>
    %99 = arith.mulf %98, %95 : vector<4x256xf32>
    %100 = arith.addf %91, %99 : vector<4x256xf32>
    %c254_i32 = arith.constant 254 : i32
    %101 = tpu.dynamic_rotate %60 by %c254_i32 dim 1 : vector<4x256xf32>, i32 -> vector<4x256xf32>
    %c5_62 = arith.constant 5 : index
    %c0_63 = arith.constant 0 : index
    %102 = vector.load %arg7[%c5_62, %c0_63] : memref<7x256xf32, #tpu.memory_space<vmem>>, vector<1x256xf32>
    %103 = vector.broadcast %102 : vector<1x256xf32> to vector<4x256xf32>
    %104 = arith.mulf %101, %103 : vector<4x256xf32>
    %c5_64 = arith.constant 5 : index
    %c0_65 = arith.constant 0 : index
    %c0_66 = arith.constant 0 : index
    %105 = vector.load %arg4[%c5_64, %c0_65, %c0_66] : memref<14x4x1xf32, #tpu.memory_space<vmem>>, vector<1x4x1xf32>
    %106 = vector.shape_cast %105 : vector<1x4x1xf32> to vector<4x1xf32>
    %107 = vector.broadcast %106 : vector<4x1xf32> to vector<4x256xf32>
    %108 = arith.mulf %107, %104 : vector<4x256xf32>
    %109 = arith.addf %100, %108 : vector<4x256xf32>
    %c253_i32 = arith.constant 253 : i32
    %110 = tpu.dynamic_rotate %60 by %c253_i32 dim 1 : vector<4x256xf32>, i32 -> vector<4x256xf32>
    %c6_67 = arith.constant 6 : index
    %c0_68 = arith.constant 0 : index
    %111 = vector.load %arg7[%c6_67, %c0_68] : memref<7x256xf32, #tpu.memory_space<vmem>>, vector<1x256xf32>
    %112 = vector.broadcast %111 : vector<1x256xf32> to vector<4x256xf32>
    %113 = arith.mulf %110, %112 : vector<4x256xf32>
    %c6_69 = arith.constant 6 : index
    %c0_70 = arith.constant 0 : index
    %c0_71 = arith.constant 0 : index
    %114 = vector.load %arg4[%c6_69, %c0_70, %c0_71] : memref<14x4x1xf32, #tpu.memory_space<vmem>>, vector<1x4x1xf32>
    %115 = vector.shape_cast %114 : vector<1x4x1xf32> to vector<4x1xf32>
    %116 = vector.broadcast %115 : vector<4x1xf32> to vector<4x256xf32>
    %117 = arith.mulf %116, %113 : vector<4x256xf32>
    %118 = arith.addf %109, %117 : vector<4x256xf32>
    %cst_72 = arith.constant dense<0.000000e+00> : vector<256xf32>
    %119 = vector.multi_reduction <add>, %118, %cst_72 [0] : vector<4x256xf32> to vector<256xf32>
    %120 = vector.shape_cast %119 : vector<256xf32> to vector<1x256xf32>
    %c0_73 = arith.constant 0 : index
    %121 = memref.load %arg8[%c0_73] : memref<5xf32, #tpu.memory_space<smem>>
    %122 = vector.broadcast %121 : f32 to vector<1x256xf32>
    %123 = arith.addf %120, %122 : vector<1x256xf32>
    %cst_74 = arith.constant 0.000000e+00 : f32
    %124 = vector.broadcast %cst_74 : f32 to vector<1x256xf32>
    %125 = arith.cmpf oge, %123, %124 : vector<1x256xf32>
    %cst_75 = arith.constant 2.000000e-02 : f32
    %126 = vector.broadcast %cst_75 : f32 to vector<1x256xf32>
    %127 = arith.mulf %126, %123 : vector<1x256xf32>
    %128 = arith.select %125, %123, %127 : vector<1x256xi1>, vector<1x256xf32>
    %c3_i32_76 = arith.constant 3 : i32
    %129 = tpu.dynamic_rotate %0 by %c3_i32_76 dim 1 : vector<4x256xf32>, i32 -> vector<4x256xf32>
    %c0_77 = arith.constant 0 : index
    %c0_78 = arith.constant 0 : index
    %130 = vector.load %arg7[%c0_77, %c0_78] : memref<7x256xf32, #tpu.memory_space<vmem>>, vector<1x256xf32>
    %131 = vector.broadcast %130 : vector<1x256xf32> to vector<4x256xf32>
    %132 = arith.mulf %129, %131 : vector<4x256xf32>
    %c0_79 = arith.constant 0 : index
    %c0_80 = arith.constant 0 : index
    %c0_81 = arith.constant 0 : index
    %133 = vector.load %arg3[%c0_79, %c0_80, %c0_81] : memref<7x4x4xf32, #tpu.memory_space<vmem>>, vector<1x4x4xf32>
    %134 = vector.shape_cast %133 : vector<1x4x4xf32> to vector<4x4xf32>
    %cst_82 = arith.constant dense<0.000000e+00> : vector<4x256xf32>
    %135 = tpu.matmul %134, %132, %cst_82 {dimension_numbers = #tpu.dot_dimension_numbers<[1], [0], [0], [1], [0, 0, 1, 1], [], []>} : vector<4x4xf32>, vector<4x256xf32>, vector<4x256xf32> -> vector<4x256xf32>
    %c2_i32_83 = arith.constant 2 : i32
    %136 = tpu.dynamic_rotate %0 by %c2_i32_83 dim 1 : vector<4x256xf32>, i32 -> vector<4x256xf32>
    %c1_84 = arith.constant 1 : index
    %c0_85 = arith.constant 0 : index
    %137 = vector.load %arg7[%c1_84, %c0_85] : memref<7x256xf32, #tpu.memory_space<vmem>>, vector<1x256xf32>
    %138 = vector.broadcast %137 : vector<1x256xf32> to vector<4x256xf32>
    %139 = arith.mulf %136, %138 : vector<4x256xf32>
    %c1_86 = arith.constant 1 : index
    %c0_87 = arith.constant 0 : index
    %c0_88 = arith.constant 0 : index
    %140 = vector.load %arg3[%c1_86, %c0_87, %c0_88] : memref<7x4x4xf32, #tpu.memory_space<vmem>>, vector<1x4x4xf32>
    %141 = vector.shape_cast %140 : vector<1x4x4xf32> to vector<4x4xf32>
    %cst_89 = arith.constant dense<0.000000e+00> : vector<4x256xf32>
    %142 = tpu.matmul %141, %139, %cst_89 {dimension_numbers = #tpu.dot_dimension_numbers<[1], [0], [0], [1], [0, 0, 1, 1], [], []>} : vector<4x4xf32>, vector<4x256xf32>, vector<4x256xf32> -> vector<4x256xf32>
    %143 = arith.addf %135, %142 : vector<4x256xf32>
    %c1_i32_90 = arith.constant 1 : i32
    %144 = tpu.dynamic_rotate %0 by %c1_i32_90 dim 1 : vector<4x256xf32>, i32 -> vector<4x256xf32>
    %c2_91 = arith.constant 2 : index
    %c0_92 = arith.constant 0 : index
    %145 = vector.load %arg7[%c2_91, %c0_92] : memref<7x256xf32, #tpu.memory_space<vmem>>, vector<1x256xf32>
    %146 = vector.broadcast %145 : vector<1x256xf32> to vector<4x256xf32>
    %147 = arith.mulf %144, %146 : vector<4x256xf32>
    %c2_93 = arith.constant 2 : index
    %c0_94 = arith.constant 0 : index
    %c0_95 = arith.constant 0 : index
    %148 = vector.load %arg3[%c2_93, %c0_94, %c0_95] : memref<7x4x4xf32, #tpu.memory_space<vmem>>, vector<1x4x4xf32>
    %149 = vector.shape_cast %148 : vector<1x4x4xf32> to vector<4x4xf32>
    %cst_96 = arith.constant dense<0.000000e+00> : vector<4x256xf32>
    %150 = tpu.matmul %149, %147, %cst_96 {dimension_numbers = #tpu.dot_dimension_numbers<[1], [0], [0], [1], [0, 0, 1, 1], [], []>} : vector<4x4xf32>, vector<4x256xf32>, vector<4x256xf32> -> vector<4x256xf32>
    %151 = arith.addf %143, %150 : vector<4x256xf32>
    %c3_97 = arith.constant 3 : index
    %c0_98 = arith.constant 0 : index
    %c0_99 = arith.constant 0 : index
    %152 = vector.load %arg3[%c3_97, %c0_98, %c0_99] : memref<7x4x4xf32, #tpu.memory_space<vmem>>, vector<1x4x4xf32>
    %153 = vector.shape_cast %152 : vector<1x4x4xf32> to vector<4x4xf32>
    %cst_100 = arith.constant dense<0.000000e+00> : vector<4x256xf32>
    %154 = tpu.matmul %153, %0, %cst_100 {dimension_numbers = #tpu.dot_dimension_numbers<[1], [0], [0], [1], [0, 0, 1, 1], [], []>} : vector<4x4xf32>, vector<4x256xf32>, vector<4x256xf32> -> vector<4x256xf32>
    %155 = arith.addf %151, %154 : vector<4x256xf32>
    %c255_i32_101 = arith.constant 255 : i32
    %156 = tpu.dynamic_rotate %0 by %c255_i32_101 dim 1 : vector<4x256xf32>, i32 -> vector<4x256xf32>
    %c4_102 = arith.constant 4 : index
    %c0_103 = arith.constant 0 : index
    %157 = vector.load %arg7[%c4_102, %c0_103] : memref<7x256xf32, #tpu.memory_space<vmem>>, vector<1x256xf32>
    %158 = vector.broadcast %157 : vector<1x256xf32> to vector<4x256xf32>
    %159 = arith.mulf %156, %158 : vector<4x256xf32>
    %c4_104 = arith.constant 4 : index
    %c0_105 = arith.constant 0 : index
    %c0_106 = arith.constant 0 : index
    %160 = vector.load %arg3[%c4_104, %c0_105, %c0_106] : memref<7x4x4xf32, #tpu.memory_space<vmem>>, vector<1x4x4xf32>
    %161 = vector.shape_cast %160 : vector<1x4x4xf32> to vector<4x4xf32>
    %cst_107 = arith.constant dense<0.000000e+00> : vector<4x256xf32>
    %162 = tpu.matmul %161, %159, %cst_107 {dimension_numbers = #tpu.dot_dimension_numbers<[1], [0], [0], [1], [0, 0, 1, 1], [], []>} : vector<4x4xf32>, vector<4x256xf32>, vector<4x256xf32> -> vector<4x256xf32>
    %163 = arith.addf %155, %162 : vector<4x256xf32>
    %c254_i32_108 = arith.constant 254 : i32
    %164 = tpu.dynamic_rotate %0 by %c254_i32_108 dim 1 : vector<4x256xf32>, i32 -> vector<4x256xf32>
    %c5_109 = arith.constant 5 : index
    %c0_110 = arith.constant 0 : index
    %165 = vector.load %arg7[%c5_109, %c0_110] : memref<7x256xf32, #tpu.memory_space<vmem>>, vector<1x256xf32>
    %166 = vector.broadcast %165 : vector<1x256xf32> to vector<4x256xf32>
    %167 = arith.mulf %164, %166 : vector<4x256xf32>
    %c5_111 = arith.constant 5 : index
    %c0_112 = arith.constant 0 : index
    %c0_113 = arith.constant 0 : index
    %168 = vector.load %arg3[%c5_111, %c0_112, %c0_113] : memref<7x4x4xf32, #tpu.memory_space<vmem>>, vector<1x4x4xf32>
    %169 = vector.shape_cast %168 : vector<1x4x4xf32> to vector<4x4xf32>
    %cst_114 = arith.constant dense<0.000000e+00> : vector<4x256xf32>
    %170 = tpu.matmul %169, %167, %cst_114 {dimension_numbers = #tpu.dot_dimension_numbers<[1], [0], [0], [1], [0, 0, 1, 1], [], []>} : vector<4x4xf32>, vector<4x256xf32>, vector<4x256xf32> -> vector<4x256xf32>
    %171 = arith.addf %163, %170 : vector<4x256xf32>
    %c253_i32_115 = arith.constant 253 : i32
    %172 = tpu.dynamic_rotate %0 by %c253_i32_115 dim 1 : vector<4x256xf32>, i32 -> vector<4x256xf32>
    %c6_116 = arith.constant 6 : index
    %c0_117 = arith.constant 0 : index
    %173 = vector.load %arg7[%c6_116, %c0_117] : memref<7x256xf32, #tpu.memory_space<vmem>>, vector<1x256xf32>
    %174 = vector.broadcast %173 : vector<1x256xf32> to vector<4x256xf32>
    %175 = arith.mulf %172, %174 : vector<4x256xf32>
    %c6_118 = arith.constant 6 : index
    %c0_119 = arith.constant 0 : index
    %c0_120 = arith.constant 0 : index
    %176 = vector.load %arg3[%c6_118, %c0_119, %c0_120] : memref<7x4x4xf32, #tpu.memory_space<vmem>>, vector<1x4x4xf32>
    %177 = vector.shape_cast %176 : vector<1x4x4xf32> to vector<4x4xf32>
    %cst_121 = arith.constant dense<0.000000e+00> : vector<4x256xf32>
    %178 = tpu.matmul %177, %175, %cst_121 {dimension_numbers = #tpu.dot_dimension_numbers<[1], [0], [0], [1], [0, 0, 1, 1], [], []>} : vector<4x4xf32>, vector<4x256xf32>, vector<4x256xf32> -> vector<4x256xf32>
    %179 = arith.addf %171, %178 : vector<4x256xf32>
    %c1_122 = arith.constant 1 : index
    %c0_123 = arith.constant 0 : index
    %c0_124 = arith.constant 0 : index
    %180 = vector.load %arg5[%c1_122, %c0_123, %c0_124] : memref<2x4x1xf32, #tpu.memory_space<vmem>>, vector<1x4x1xf32>
    %181 = vector.shape_cast %180 : vector<1x4x1xf32> to vector<4x1xf32>
    %182 = vector.broadcast %181 : vector<4x1xf32> to vector<4x256xf32>
    %183 = arith.addf %179, %182 : vector<4x256xf32>
    %cst_125 = arith.constant 0.000000e+00 : f32
    %184 = vector.broadcast %cst_125 : f32 to vector<4x256xf32>
    %185 = arith.cmpf oge, %183, %184 : vector<4x256xf32>
    %cst_126 = arith.constant 2.000000e-02 : f32
    %186 = vector.broadcast %cst_126 : f32 to vector<4x256xf32>
    %187 = arith.mulf %186, %183 : vector<4x256xf32>
    %188 = arith.select %185, %183, %187 : vector<4x256xi1>, vector<4x256xf32>
    %c48_i32_127 = arith.constant 48 : i32
    %189 = tpu.dynamic_rotate %188 by %c48_i32_127 dim 1 : vector<4x256xf32>, i32 -> vector<4x256xf32>
    %c0_128 = arith.constant 0 : index
    %c0_129 = arith.constant 0 : index
    %190 = vector.load %arg6[%c0_128, %c0_129] : memref<7x256xf32, #tpu.memory_space<vmem>>, vector<1x256xf32>
    %191 = vector.broadcast %190 : vector<1x256xf32> to vector<4x256xf32>
    %192 = arith.mulf %189, %191 : vector<4x256xf32>
    %c7 = arith.constant 7 : index
    %c0_130 = arith.constant 0 : index
    %c0_131 = arith.constant 0 : index
    %193 = vector.load %arg4[%c7, %c0_130, %c0_131] : memref<14x4x1xf32, #tpu.memory_space<vmem>>, vector<1x4x1xf32>
    %194 = vector.shape_cast %193 : vector<1x4x1xf32> to vector<4x1xf32>
    %195 = vector.broadcast %194 : vector<4x1xf32> to vector<4x256xf32>
    %196 = arith.mulf %195, %192 : vector<4x256xf32>
    %c32_i32_132 = arith.constant 32 : i32
    %197 = tpu.dynamic_rotate %188 by %c32_i32_132 dim 1 : vector<4x256xf32>, i32 -> vector<4x256xf32>
    %c1_133 = arith.constant 1 : index
    %c0_134 = arith.constant 0 : index
    %198 = vector.load %arg6[%c1_133, %c0_134] : memref<7x256xf32, #tpu.memory_space<vmem>>, vector<1x256xf32>
    %199 = vector.broadcast %198 : vector<1x256xf32> to vector<4x256xf32>
    %200 = arith.mulf %197, %199 : vector<4x256xf32>
    %c8 = arith.constant 8 : index
    %c0_135 = arith.constant 0 : index
    %c0_136 = arith.constant 0 : index
    %201 = vector.load %arg4[%c8, %c0_135, %c0_136] : memref<14x4x1xf32, #tpu.memory_space<vmem>>, vector<1x4x1xf32>
    %202 = vector.shape_cast %201 : vector<1x4x1xf32> to vector<4x1xf32>
    %203 = vector.broadcast %202 : vector<4x1xf32> to vector<4x256xf32>
    %204 = arith.mulf %203, %200 : vector<4x256xf32>
    %205 = arith.addf %196, %204 : vector<4x256xf32>
    %c16_i32_137 = arith.constant 16 : i32
    %206 = tpu.dynamic_rotate %188 by %c16_i32_137 dim 1 : vector<4x256xf32>, i32 -> vector<4x256xf32>
    %c2_138 = arith.constant 2 : index
    %c0_139 = arith.constant 0 : index
    %207 = vector.load %arg6[%c2_138, %c0_139] : memref<7x256xf32, #tpu.memory_space<vmem>>, vector<1x256xf32>
    %208 = vector.broadcast %207 : vector<1x256xf32> to vector<4x256xf32>
    %209 = arith.mulf %206, %208 : vector<4x256xf32>
    %c9 = arith.constant 9 : index
    %c0_140 = arith.constant 0 : index
    %c0_141 = arith.constant 0 : index
    %210 = vector.load %arg4[%c9, %c0_140, %c0_141] : memref<14x4x1xf32, #tpu.memory_space<vmem>>, vector<1x4x1xf32>
    %211 = vector.shape_cast %210 : vector<1x4x1xf32> to vector<4x1xf32>
    %212 = vector.broadcast %211 : vector<4x1xf32> to vector<4x256xf32>
    %213 = arith.mulf %212, %209 : vector<4x256xf32>
    %214 = arith.addf %205, %213 : vector<4x256xf32>
    %c10 = arith.constant 10 : index
    %c0_142 = arith.constant 0 : index
    %c0_143 = arith.constant 0 : index
    %215 = vector.load %arg4[%c10, %c0_142, %c0_143] : memref<14x4x1xf32, #tpu.memory_space<vmem>>, vector<1x4x1xf32>
    %216 = vector.shape_cast %215 : vector<1x4x1xf32> to vector<4x1xf32>
    %217 = vector.broadcast %216 : vector<4x1xf32> to vector<4x256xf32>
    %218 = arith.mulf %217, %188 : vector<4x256xf32>
    %219 = arith.addf %214, %218 : vector<4x256xf32>
    %c240_i32_144 = arith.constant 240 : i32
    %220 = tpu.dynamic_rotate %188 by %c240_i32_144 dim 1 : vector<4x256xf32>, i32 -> vector<4x256xf32>
    %c4_145 = arith.constant 4 : index
    %c0_146 = arith.constant 0 : index
    %221 = vector.load %arg6[%c4_145, %c0_146] : memref<7x256xf32, #tpu.memory_space<vmem>>, vector<1x256xf32>
    %222 = vector.broadcast %221 : vector<1x256xf32> to vector<4x256xf32>
    %223 = arith.mulf %220, %222 : vector<4x256xf32>
    %c11 = arith.constant 11 : index
    %c0_147 = arith.constant 0 : index
    %c0_148 = arith.constant 0 : index
    %224 = vector.load %arg4[%c11, %c0_147, %c0_148] : memref<14x4x1xf32, #tpu.memory_space<vmem>>, vector<1x4x1xf32>
    %225 = vector.shape_cast %224 : vector<1x4x1xf32> to vector<4x1xf32>
    %226 = vector.broadcast %225 : vector<4x1xf32> to vector<4x256xf32>
    %227 = arith.mulf %226, %223 : vector<4x256xf32>
    %228 = arith.addf %219, %227 : vector<4x256xf32>
    %c224_i32_149 = arith.constant 224 : i32
    %229 = tpu.dynamic_rotate %188 by %c224_i32_149 dim 1 : vector<4x256xf32>, i32 -> vector<4x256xf32>
    %c5_150 = arith.constant 5 : index
    %c0_151 = arith.constant 0 : index
    %230 = vector.load %arg6[%c5_150, %c0_151] : memref<7x256xf32, #tpu.memory_space<vmem>>, vector<1x256xf32>
    %231 = vector.broadcast %230 : vector<1x256xf32> to vector<4x256xf32>
    %232 = arith.mulf %229, %231 : vector<4x256xf32>
    %c12 = arith.constant 12 : index
    %c0_152 = arith.constant 0 : index
    %c0_153 = arith.constant 0 : index
    %233 = vector.load %arg4[%c12, %c0_152, %c0_153] : memref<14x4x1xf32, #tpu.memory_space<vmem>>, vector<1x4x1xf32>
    %234 = vector.shape_cast %233 : vector<1x4x1xf32> to vector<4x1xf32>
    %235 = vector.broadcast %234 : vector<4x1xf32> to vector<4x256xf32>
    %236 = arith.mulf %235, %232 : vector<4x256xf32>
    %237 = arith.addf %228, %236 : vector<4x256xf32>
    %c208_i32_154 = arith.constant 208 : i32
    %238 = tpu.dynamic_rotate %188 by %c208_i32_154 dim 1 : vector<4x256xf32>, i32 -> vector<4x256xf32>
    %c6_155 = arith.constant 6 : index
    %c0_156 = arith.constant 0 : index
    %239 = vector.load %arg6[%c6_155, %c0_156] : memref<7x256xf32, #tpu.memory_space<vmem>>, vector<1x256xf32>
    %240 = vector.broadcast %239 : vector<1x256xf32> to vector<4x256xf32>
    %241 = arith.mulf %238, %240 : vector<4x256xf32>
    %c13 = arith.constant 13 : index
    %c0_157 = arith.constant 0 : index
    %c0_158 = arith.constant 0 : index
    %242 = vector.load %arg4[%c13, %c0_157, %c0_158] : memref<14x4x1xf32, #tpu.memory_space<vmem>>, vector<1x4x1xf32>
    %243 = vector.shape_cast %242 : vector<1x4x1xf32> to vector<4x1xf32>
    %244 = vector.broadcast %243 : vector<4x1xf32> to vector<4x256xf32>
    %245 = arith.mulf %244, %241 : vector<4x256xf32>
    %246 = arith.addf %237, %245 : vector<4x256xf32>
    %cst_159 = arith.constant dense<0.000000e+00> : vector<256xf32>
    %247 = vector.multi_reduction <add>, %246, %cst_159 [0] : vector<4x256xf32> to vector<256xf32>
    %248 = vector.shape_cast %247 : vector<256xf32> to vector<1x256xf32>
    %c1_160 = arith.constant 1 : index
    %249 = memref.load %arg8[%c1_160] : memref<5xf32, #tpu.memory_space<smem>>
    %250 = vector.broadcast %249 : f32 to vector<1x256xf32>
    %251 = arith.addf %248, %250 : vector<1x256xf32>
    %cst_161 = arith.constant 0.000000e+00 : f32
    %252 = vector.broadcast %cst_161 : f32 to vector<1x256xf32>
    %253 = arith.cmpf oge, %251, %252 : vector<1x256xf32>
    %cst_162 = arith.constant 2.000000e-02 : f32
    %254 = vector.broadcast %cst_162 : f32 to vector<1x256xf32>
    %255 = arith.mulf %254, %251 : vector<1x256xf32>
    %256 = arith.select %253, %251, %255 : vector<1x256xi1>, vector<1x256xf32>
    %c2_163 = arith.constant 2 : index
    %257 = memref.load %arg8[%c2_163] : memref<5xf32, #tpu.memory_space<smem>>
    %258 = vector.broadcast %257 : f32 to vector<1x256xf32>
    %259 = arith.mulf %258, %128 : vector<1x256xf32>
    %c3_164 = arith.constant 3 : index
    %260 = memref.load %arg8[%c3_164] : memref<5xf32, #tpu.memory_space<smem>>
    %261 = vector.broadcast %260 : f32 to vector<1x256xf32>
    %262 = arith.mulf %261, %256 : vector<1x256xf32>
    %263 = arith.addf %259, %262 : vector<1x256xf32>
    %c4_165 = arith.constant 4 : index
    %264 = memref.load %arg8[%c4_165] : memref<5xf32, #tpu.memory_space<smem>>
    %265 = vector.broadcast %264 : f32 to vector<1x256xf32>
    %266 = arith.addf %263, %265 : vector<1x256xf32>
    %267 = arith.negf %266 : vector<1x256xf32>
    %268 = math.exp %267 : vector<1x256xf32>
    %cst_166 = arith.constant 1.000000e+00 : f32
    %269 = vector.broadcast %cst_166 : f32 to vector<1x256xf32>
    %270 = arith.addf %269, %268 : vector<1x256xf32>
    %271 = arith.divf %269, %270 : vector<1x256xf32>
    %c0_167 = arith.constant 0 : index
    %c0_168 = arith.constant 0 : index
    %272 = vector.load %arg9[%c0_167, %c0_168] : memref<1x256xf32, #tpu.memory_space<vmem>>, vector<1x256xf32>
    tpu.vector_store %arg9[%c0_167, %c0_168], %271 {strides = array<i32>} : memref<1x256xf32, #tpu.memory_space<vmem>>, vector<1x256xf32>,
    return
  }
  func.func @transform_0(%arg0: i32) -> (i32, i32) {
    %c0_i32 = arith.constant 0 : i32
    %c0_i32_0 = arith.constant 0 : i32
    return %c0_i32, %arg0 : i32, i32
  }
  func.func @transform_1(%arg0: i32) -> (i32, i32, i32) {
    %c0_i32 = arith.constant 0 : i32
    %c0_i32_0 = arith.constant 0 : i32
    %c0_i32_1 = arith.constant 0 : i32
    %c0_i32_2 = arith.constant 0 : i32
    return %c0_i32, %c0_i32_0, %c0_i32_1 : i32, i32, i32
  }
  func.func @transform_2(%arg0: i32) -> (i32, i32, i32) {
    %c0_i32 = arith.constant 0 : i32
    %c0_i32_0 = arith.constant 0 : i32
    %c0_i32_1 = arith.constant 0 : i32
    %c0_i32_2 = arith.constant 0 : i32
    return %c0_i32, %c0_i32_0, %c0_i32_1 : i32, i32, i32
  }
  func.func @transform_3(%arg0: i32) -> (i32, i32, i32) {
    %c0_i32 = arith.constant 0 : i32
    %c0_i32_0 = arith.constant 0 : i32
    %c0_i32_1 = arith.constant 0 : i32
    %c0_i32_2 = arith.constant 0 : i32
    return %c0_i32, %c0_i32_0, %c0_i32_1 : i32, i32, i32
  }
  func.func @transform_4(%arg0: i32) -> (i32, i32, i32) {
    %c0_i32 = arith.constant 0 : i32
    %c0_i32_0 = arith.constant 0 : i32
    %c0_i32_1 = arith.constant 0 : i32
    %c0_i32_2 = arith.constant 0 : i32
    return %c0_i32, %c0_i32_0, %c0_i32_1 : i32, i32, i32
  }
  func.func @transform_5(%arg0: i32) -> (i32, i32) {
    %c0_i32 = arith.constant 0 : i32
    %c0_i32_0 = arith.constant 0 : i32
    %c0_i32_1 = arith.constant 0 : i32
    return %c0_i32, %c0_i32_0 : i32, i32
  }
  func.func @transform_6(%arg0: i32) -> (i32, i32) {
    %c0_i32 = arith.constant 0 : i32
    %c0_i32_0 = arith.constant 0 : i32
    %c0_i32_1 = arith.constant 0 : i32
    return %c0_i32, %c0_i32_0 : i32, i32
  }
  func.func @transform_7(%arg0: i32) -> i32 {
    %c0_i32 = arith.constant 0 : i32
    %c0_i32_0 = arith.constant 0 : i32
    return %c0_i32 : i32
  }
  func.func @transform_8(%arg0: i32) -> (i32, i32) {
    %c0_i32 = arith.constant 0 : i32
    %c0_i32_0 = arith.constant 0 : i32
    return %c0_i32, %arg0 : i32, i32
  }
}

</mosaic_0001>

<bundles_post_ra>
// kernel: tpu_custom_call.1
= control target key start
LH: loop header
LB: loop body
LE: loop exit
PB: predicated region body
PF: predicated region fallthrough
CT: control target
= control target key end

     0   :  { %13 = vsyncpa [#allocation4], 0  ;;  %s2781_s0 = inlined_call_operand.vmem [shape: f32[4,512], index: 0, kind: input, shape index: {}]   ;;  %s2782_s1 = inlined_call_operand.vmem [shape: f32[7,4,4], index: 1, kind: input, shape index: {}]   ;;  %s2783_s2 = inlined_call_operand.vmem [shape: f32[7,4,4], index: 2, kind: input, shape index: {}]   ;;  %s2784_s3 = inlined_call_operand.vmem [shape: f32[14,4,1], index: 3, kind: input, shape index: {}]   ;;  %s2785_s4 = inlined_call_operand.vmem [shape: f32[2,4,1], index: 4, kind: input, shape index: {}]   ;;  %s2786_s5 = inlined_call_operand.vmem [shape: f32[7,256], index: 5, kind: input, shape index: {}]   ;;  %s2787_s6 = inlined_call_operand.vmem [shape: f32[7,256], index: 6, kind: input, shape index: {}]   ;;  %s2788_s7 = inlined_call_operand.vmem [shape: f32[5], index: 7, kind: input, shape index: {}]   ;;  %s2789_s8 = inlined_call_operand.hbm [shape: f32[1,512], index: 8, kind: output, shape index: {}]  }
   0x1   :  { %14 = vsyncpa [#allocation3], 0 }
   0x2   :  { %16 = vsyncpa [#allocation3 + $0x1], 0  ;;  %s2110_s27 = smov 0   ;;  %s2112_s28 = smov 0  }
   0x3   :  { %s2114_s29 = smov 0   ;;  %s2116_s30 = smov 0  }
   0x4 LB: > { %s1782_s9 = sadd.s32 4294967295, %s2049_s30   ;;  %s1783_s10 = sadd.s32 4294967294, %s2049_s30   ;;  %s2049_s30 = sphi %s2116_s30, %s2820_s30   ;;  %s2045_s29 = sphi %s2114_s29, %s2819_s29   ;;  %s2041_s28 = sphi %s2112_s28, %s2818_s28   ;;  %s2037_s27 = sphi %s2110_s27, %s2817_s27  }
   0x5   : > { %s2133_s11 = sadd.s32 1, %s2049_s30   ;;  %s202_s12 = sadd.s32 1, %s2045_s29 }
   0x6   : > { %s199_s13 = ssub.s32 %s2049_s30, %s2133_s11  ;;  %p212_p0 = scmp.ne.s32.totalorder %s2045_s29, %s2041_s28 }
   0x7   : > { %p200_p1 = scmp.eq.s32.totalorder %s199_s13, 0  ;;  %p213_p2 = scmp.eq.s32.totalorder %s1782_s9, 1 }
   0x8   : > { %p218_p3 = scmp.ne.s32.totalorder %s2041_s28, %s2037_s27  ;;  %p219_p4 = scmp.eq.s32.totalorder %s1783_s10, 1 }
   0x9   : > { %s2143_s14 = scalar_select %p200_p1, %s2045_s29, %s202_s12  }
   0xa   : > { %p2145_p5 = por %p213_p2, %p212_p0  ;;  %p2149_p6 = por %p219_p4, %p218_p3 }
   0xb   : > { %p1784_p7 = scmp.ge.s32.totalorder %s2049_s30, 1  ;;  %p226_p8 = scmp.lt.s32.totalorder %s2049_s30, 3 }
   0xc   : > { %p1908_p9 = scmp.eq.s32.totalorder %s1782_s9, 0  ;;  %s256_s19 = sshll.u32 %s2788_s7, 4  ;;  %s257_s19 = int_to_ptr.vmem [resolvable:$true] %s256_s19 }
   0xd   : > { %p227_p10 = pnand %p1784_p7, %p226_p8  ;;  %s2051_s20 = smov [#allocation2]  }
   0xf   : > { %p1900_p11 = pneg %p227_p10  ;;  %278 = sbr.rel (%p227_p10) target bundleno = 619 (0x26b), region = 52 }
  0x11   : > { %p1901_p12 = pnand %p1908_p9, %p1900_p11 }
  0x13   : > { %1903 = dma.vmem_to_smem (!%p1901_p12), %s257_s19, 16, %s2051_s20, [#allocation4]  }
  0x14   : > { %2028 = dma.done.wait (%p1908_p9), [#allocation4], 16  }
  0x15   : > { %2030 = vsyncadd (%p1908_p9), [#allocation4], 4294967280 }
  0x16   : > { %285 = sfence }
  0x17   : > { %s2158_s21 = sshll.u32 %s1782_s9, 1  ;;  %s2052_s10 = smov 48   ;;  %v2800_v29 = vlaneseq  ;;  %v2219_v33 = vld [vmem:[%s2786_s5] ss:$8 sm:$0x3]  ;;  %vm373_vm1 = vcmask 1043456  }
  0x18   : > { %p315_p13 = scmp.lt.s32.totalorder %s2158_s21, 3  ;;  %s2798_s9 = smov 32   ;;  %v339_v34 = vperm.slane %v2219_v33, 0  ;;  %v340_v35 = vperm.slane %v2219_v33, 1  ;;  %vm369_vm2 = vcmask 31744   ;;  %v2064_v62 = vmov 0  }
  0x19   : > { %s2796_s12 = smov 16   ;;  %s2792_s13 = smov 112   ;;  %v2214_v31 = vand.u32 127, %v2800_v29  ;;  %v345_v41 = vld [vmem:[%s2782_s1] sm:$0xf]  ;;  %1957 = vset.pattern.permute.xlu0 %v2064_v62  ;;  %1958 = vset.pattern.permute.xlu1 %v2064_v62 }
  0x1a   : > { %s316_s22 = scalar_select %p315_p13, %s2158_s21, 3  ;;  %v2238_v43 = vld [vmem:[%s2786_s5 + $0x1] ss:$8 sm:$0x3]  ;;  %v1793_v56 = vld [vmem:[%s2782_s1 + $0x4] sm:$0xf]  ;;  %1959 = vset.pattern.permute.xlu2 %v2064_v62 }
  0x1b   : > { %s2794_s17 = smov 96   ;;  %s2790_s18 = smov 80   ;;  %vm334_vm0 = vcmp.lt.s32.totalorder %v2214_v31, 48  ;;  %v2243_v44 = vld [vmem:[%s2786_s5 + $0x2] ss:$8 sm:$0x3] }
  0x1c   : > { %s1791_s23 = sshll.u32 %s316_s22, 2  ;;  %s2058_s19 = smov 2   ;;  %vm478_vm3 = vcmp.lt.s32.totalorder %v2214_v31, 16  ;;  %vm355_vm4 = vcmp.lt.s32.totalorder %v2214_v31, 32  ;;  %v361_v46 = vperm.slane %v2238_v43, 0  ;;  %v484_v47 = vperm.slane %v2243_v44, 0 }
  0x1d   : > { %s318_s26 = scalar_lea.vmem %s2781_s0, %s1791_s23  ;;  %s2059_s20 = smov 1   ;;  %v362_v48 = vperm.slane %v2238_v43, 1  ;;  %v485_v49 = vperm.slane %v2243_v44, 1  ;;  %v1808_v60 = vld [vmem:[%s2782_s1 + $0xc] sm:$0xf]  ;;  %vm606_vm5 = vcmp.lt.s32.totalorder %v2214_v31, 112 }
  0x1e   : > { %v2165_v0 = vld [vmem:[%s318_s26] sm:$0xff]  ;;  %s2060_s22 = smov 3   ;;  %s2061_s23 = smov 127   ;;  %v1803_v63 = vld [vmem:[%s2782_s1 + $0x8] sm:$0xf]  ;;  %vm680_vm6 = vcmp.lt.s32.totalorder %v2214_v31, 96 }
  0x1f   : > { %323 = vst [vmem:[#allocation1] ss:$2 sm:$0xff] %v2165_v0  ;;  %s2062_s24 = smov 126   ;;  %s2063_s25 = smov 125   ;;  %v819_v61 = vld [vmem:[%s2785_s4] sm:$0xf] }
  0x20   : > { %vm754_vm7 = vcmp.lt.s32.totalorder %v2214_v31, 80  ;;  %vm860_vm8 = vcmp.lt.s32.totalorder %v2214_v31, 2  ;;  %vm887_vm9 = vcmp.lt.s32.totalorder %v2214_v31, 1  ;;  %vm837_vm10 = vcmp.lt.s32.totalorder %v2214_v31, 3 }
  0x21   : > { %vm925_vm11 = vcmp.lt.s32.totalorder %v2214_v31, 127  ;;  %vm952_vm12 = vcmp.lt.s32.totalorder %v2214_v31, 126  ;;  %vm979_vm13 = vcmp.lt.s32.totalorder %v2214_v31, 125 }
  0x26   : > { %v324_v1 = vld.sshfl [vmem:[#allocation1] sm:$0xff pattern:$0x75316420]  ;;  %v325_v2 = vld.sshfl [vmem:[#allocation1 + $0x8] sm:$0xff pattern:$0x75316420] }
  0x27   : > { %328 = vrot.lane.b32.xlu0 %v324_v1, %s2052_s10  ;;  %346 = vst [vmem:[#allocation1] ss:$2 sm:$0xff] %v2165_v0 }
  0x2e   : > { %v347_v3 = vld.sshfl [vmem:[#allocation1] sm:$0xff pattern:$0x75316420]  ;;  %v348_v4 = vld.sshfl [vmem:[#allocation1 + $0x8] sm:$0xff pattern:$0x75316420] }
  0x2f   : > { %351 = vrot.lane.b32.xlu1 %v347_v3, %s2798_s9  ;;  %330 = vrot.lane.b32.xlu0 %v325_v2, %s2052_s10  ;;  %469 = vst [vmem:[#allocation1] ss:$2 sm:$0xff] %v2165_v0 }
  0x36   : > { %v470_v5 = vld.sshfl [vmem:[#allocation1] sm:$0xff pattern:$0x75316420]  ;;  %v471_v6 = vld.sshfl [vmem:[#allocation1 + $0x8] sm:$0xff pattern:$0x75316420] }
  0x37   : > { %353 = vrot.lane.b32.xlu1 %v348_v4, %s2798_s9  ;;  %545 = vst [vmem:[#allocation1] ss:$2 sm:$0xff] %v2165_v0  ;;  %474 = vrot.lane.b32.xlu2 %v470_v5, %s2796_s12 }
  0x3e   : > { %v2176_v7 = vld.sshfl [vmem:[#allocation1] sm:$0xff pattern:$0x75316420]  ;;  %v2178_v8 = vld.sshfl [vmem:[#allocation1 + $0x8] sm:$0xff pattern:$0x75316420] }
  0x3f   : > { %597 = vst [vmem:[#allocation1] ss:$2 sm:$0xff] %v2165_v0  ;;  %476 = vrot.lane.b32.xlu2 %v471_v6, %s2796_s12 }
  0x46   : > { %v599_v9 = vld.sshfl [vmem:[#allocation1 + $0x8] sm:$0xff pattern:$0x75316420]  ;;  %v598_v10 = vld.sshfl [vmem:[#allocation1] sm:$0xff pattern:$0x75316420] }
  0x47   : > { %604 = vrot.lane.b32.xlu0 %v599_v9, %s2792_s13  ;;  %671 = vst [vmem:[#allocation1] ss:$2 sm:$0xff] %v2165_v0  ;;  %602 = vrot.lane.b32.xlu2 %v598_v10, %s2792_s13  ;;  %v1814_v9 = vld [vmem:[%s2782_s1 + $0x10] sm:$0xf]  ;;  %s1884_s13 = sld [smem:[#allocation2 + $0x1]] }
  0x48   : > { %v2319_v10 = vld [vmem:[%s2786_s5 + $0x5] ss:$8 sm:$0x3] }
  0x4e   : > { %v673_v11 = vld.sshfl [vmem:[#allocation1 + $0x8] sm:$0xff pattern:$0x75316420]  ;;  %v672_v12 = vld.sshfl [vmem:[#allocation1] sm:$0xff pattern:$0x75316420] }
  0x4f   : > { %678 = vrot.lane.b32.xlu1 %v673_v11, %s2794_s17  ;;  %676 = vrot.lane.b32.xlu0 %v672_v12, %s2794_s17  ;;  %745 = vst [vmem:[#allocation1] ss:$2 sm:$0xff] %v2165_v0  ;;  %v686_v11 = vperm.slane %v2319_v10, 0  ;;  %v687_v12 = vperm.slane %v2319_v10, 1  ;;  %s1016_s17 = sld [smem:[#allocation2]] }
  0x56   : > { %v747_v13 = vld.sshfl [vmem:[#allocation1 + $0x8] sm:$0xff pattern:$0x75316420]  ;;  %v746_v14 = vld.sshfl [vmem:[#allocation1] sm:$0xff pattern:$0x75316420] }
  0x57   : > { %752 = vrot.lane.b32.xlu1 %v747_v13, %s2790_s18  ;;  %750 = vrot.lane.b32.xlu0 %v746_v14, %s2790_s18  ;;  %1026 = vst [vmem:[#allocation1] ss:$2 sm:$0xff] %v2165_v0  ;;  %s1707_s18 = scalar_lea.hbm %s2789_s8, %s2158_s21 }
  0x58   : > { %s1711_s12 = sshll.u32 %s1707_s18, 4  ;;  %s1712_s12 = int_to_ptr.hbm [resolvable:$true] %s1711_s12 }
  0x5e   : > { %v1027_v15 = vld.sshfl [vmem:[#allocation1] sm:$0xff pattern:$0x75316420]  ;;  %v1028_v16 = vld.sshfl [vmem:[#allocation1 + $0x8] sm:$0xff pattern:$0x75316420] }
  0x5f   : > { %1040 = vst [vmem:[#allocation1] ss:$2 sm:$0xff] %v2165_v0 }
  0x66   : > { %v1041_v17 = vld.sshfl [vmem:[#allocation1] sm:$0xff pattern:$0x75316420]  ;;  %v1042_v18 = vld.sshfl [vmem:[#allocation1 + $0x8] sm:$0xff pattern:$0x75316420] }
  0x67   : > { %1045 = vrot.lane.b32.xlu1 %v1041_v17, %s2058_s19  ;;  %1153 = vst [vmem:[#allocation1] ss:$2 sm:$0xff] %v2165_v0  ;;  %1047 = vrot.lane.b32.xlu2 %v1042_v18, %s2058_s19 }
  0x6e   : > { %v1155_v19 = vld.sshfl [vmem:[#allocation1 + $0x8] sm:$0xff pattern:$0x75316420]  ;;  %v1154_v20 = vld.sshfl [vmem:[#allocation1] sm:$0xff pattern:$0x75316420] }
  0x6f   : > { %1160 = vrot.lane.b32.xlu0 %v1155_v19, %s2059_s20  ;;  %1221 = vst [vmem:[#allocation1] ss:$2 sm:$0xff] %v2165_v0  ;;  %1031 = vrot.lane.b32.xlu1 %v1027_v15, %s2060_s22  ;;  %v1820_v19 = vld [vmem:[%s2782_s1 + $0x14] sm:$0xf] }
  0x70   : > { %1158 = vrot.lane.b32.xlu2 %v1154_v20, %s2059_s20  ;;  %v2342_v20 = vld [vmem:[%s2786_s5 + $0x6] ss:$8 sm:$0x3] }
  0x76   : > { %v2199_v21 = vld.sshfl [vmem:[#allocation1] sm:$0xff pattern:$0x75316420]  ;;  %v2201_v22 = vld.sshfl [vmem:[#allocation1 + $0x8] sm:$0xff pattern:$0x75316420] }
  0x77   : > { %1273 = vst [vmem:[#allocation1] ss:$2 sm:$0xff] %v2165_v0 }
  0x78   : > { %1033 = vrot.lane.b32.xlu2 %v1028_v16, %s2060_s22 }
  0x7e   : > { %v1275_v23 = vld.sshfl [vmem:[#allocation1 + $0x8] sm:$0xff pattern:$0x75316420]  ;;  %v1274_v24 = vld.sshfl [vmem:[#allocation1] sm:$0xff pattern:$0x75316420] }
  0x7f   : > { %1280 = vrot.lane.b32.xlu1 %v1275_v23, %s2061_s23  ;;  %1278 = vrot.lane.b32.xlu0 %v1274_v24, %s2061_s23  ;;  %1339 = vst [vmem:[#allocation1] ss:$2 sm:$0xff] %v2165_v0  ;;  %v760_v23 = vperm.slane %v2342_v20, 0  ;;  %v2803_v24 = vperm.slane %v2342_v20, 1 }
  0x86   : > { %v1340_v25 = vld.sshfl [vmem:[#allocation1] sm:$0xff pattern:$0x75316420]  ;;  %v1341_v26 = vld.sshfl [vmem:[#allocation1 + $0x8] sm:$0xff pattern:$0x75316420] }
  0x87   : > { %1344 = vrot.lane.b32.xlu1 %v1340_v25, %s2062_s24  ;;  %1405 = vst [vmem:[#allocation1] ss:$2 sm:$0xff] %v2165_v0  ;;  %v2298_v0 = vld [vmem:[%s2786_s5 + $0x4] ss:$8 sm:$0x3] }
  0x88   : > { %v612_v1 = vperm.slane %v2298_v0, 0  ;;  %v613_v2 = vperm.slane %v2298_v0, 1  ;;  %v1835_v25 = vld [vmem:[%s2784_s3 + $0xc] sm:$0xf] }
  0x8e   : > { %v1407_v27 = vld.sshfl [vmem:[#allocation1 + $0x8] sm:$0xff pattern:$0x75316420]  ;;  %v1406_v28 = vld.sshfl [vmem:[#allocation1] sm:$0xff pattern:$0x75316420] }
  0x8f   : > { %1412 = vrot.lane.b32.xlu0 %v1407_v27, %s2063_s25  ;;  %1410 = vrot.lane.b32.xlu2 %v1406_v28, %s2063_s25 }
  0x91   : > { %v475_v32 = vpop.permute.xlu2 %474 }
  0x97   : > { %1346 = vrot.lane.b32.xlu2 %v1341_v26, %s2062_s24  ;;  %822 = vperm.xlu0 %1957, %v819_v61  }
  0x99   : > { %v329_v30 = vpop.permute.xlu0 %328  ;;  %v477_v45 = vpop.permute.xlu2 %476 }
  0x9a   : > { %v480_v50 = vsel %vm478_vm3, %v477_v45, %v475_v32  ;;  %v479_v52 = vsel %vm478_vm3, %v475_v32, %v477_v45  ;;  %v1878_v45 = vld [vmem:[%s2784_s3 + $0x20] sm:$0xf] }
  0x9b   : > { %v488_v57 = vmul.f32 %v484_v47, %v480_v50  ;;  %v489_v59 = vmul.f32 %v485_v49, %v479_v52 }
  0x9f   : > { %914 = vperm.xlu0 %1957, %v1835_v25   ;;  %v2457_v25 = vld [vmem:[%s2787_s6 + $0x4] ss:$8 sm:$0x3] }
  0xa1   : > { %v352_v36 = vpop.permute.xlu1 %351  ;;  %v331_v37 = vpop.permute.xlu0 %330 }
  0xa2   : > { %v335_v38 = vsel %vm334_vm0, %v329_v30, %v331_v37  ;;  %v336_v39 = vsel %vm334_vm0, %v331_v37, %v329_v30  ;;  %v603_v3 = vpop.permute.xlu2 %602  ;;  %v1826_v37 = vld [vmem:[%s2782_s1 + $0x18] sm:$0xf] }
  0xa3   : > { %v343_v40 = vmul.f32 %v339_v34, %v336_v39  ;;  %v344_v42 = vmul.f32 %v340_v35, %v335_v38  ;;  %v2372_v39 = vld [vmem:[%s2787_s6 + $0x1] ss:$8 sm:$0x3] }
  0xa5   : > { %1798 = vmatpush.msk.msra.mxu2 %vm373_vm1, %v343_v40  ;;  %1800 = vmatpush.msk.msra.mxu3 %vm373_vm1, %v344_v42  ;;  %v867_v42 = vperm.slane %v2372_v39, 1 }
  0xa6   : > { %1799 = vmatmul.msk.f32.vlgmr.msra.gmra.mxu2 %vm369_vm2, %v345_v41  ;;  %1801 = vmatmul.msk.f32.vlgmr.msra.gmra.mxu3 %vm369_vm2, %v345_v41  ;;  %v866_v41 = vperm.slane %v2372_v39, 0 }
  0xa7   : > { %1809 = vmatpush.msk.msrb.mxu2 %vm373_vm1, %v2176_v7  ;;  %1811 = vmatpush.msk.msrb.mxu3 %vm373_vm1, %v2178_v8 }
  0xa8   : > { %1515 = vperm.xlu0 %1957, %v1878_v45  }
  0xa9   : > { %v354_v51 = vpop.permute.xlu1 %353 }
  0xaa   : > { %v356_v53 = vsel %vm355_vm4, %v352_v36, %v354_v51  ;;  %v357_v54 = vsel %vm355_vm4, %v354_v51, %v352_v36 }
  0xab   : > { %v365_v55 = vmul.f32 %v361_v46, %v357_v54  ;;  %v366_v58 = vmul.f32 %v362_v48, %v356_v53 }
  0xad   : > { %1794 = vmatpush.msk.msra.mxu0 %vm373_vm1, %v365_v55  ;;  %1796 = vmatpush.msk.msra.mxu1 %vm373_vm1, %v366_v58  ;;  %v1842_v55 = vld [vmem:[%s2783_s2 + $0x4] sm:$0xf] }
  0xae   : > { %1795 = vmatmul.msk.f32.vlgmr.msra.gmra.mxu0 %vm369_vm2, %v1793_v56  ;;  %1797 = vmatmul.msk.f32.vlgmr.msra.gmra.mxu1 %vm369_vm2, %v1793_v56  ;;  %v2394_v56 = vld [vmem:[%s2787_s6 + $0x2] ss:$8 sm:$0x3] }
  0xaf   : > { %1804 = vmatpush.msk.msrb.mxu0 %vm373_vm1, %v488_v57  ;;  %1810 = vmatmul.msk.f32.vlgmr.msrb.gmra.mxu2 %vm369_vm2, %v1808_v60  ;;  %v2399_v57 = vld [vmem:[%s2787_s6] ss:$8 sm:$0x3]  ;;  %v893_v58 = vperm.slane %v2394_v56, 0 }
  0xb0   : > { %1806 = vmatpush.msk.msrb.mxu1 %vm373_vm1, %v489_v59  ;;  %1812 = vmatmul.msk.f32.vlgmr.msrb.gmra.mxu3 %vm369_vm2, %v1808_v60  ;;  %v894_v59 = vperm.slane %v2394_v56, 1  ;;  %v842_v60 = vperm.slane %v2399_v57, 0  ;;  %v843_v61 = vperm.slane %v2399_v57, 1 }
  0xb6   : > { %1805 = vmatmul.msk.f32.vlgmr.msrb.gmra.mxu0 %vm369_vm2, %v1803_v63  ;;  %1807 = vmatmul.msk.f32.vlgmr.msrb.gmra.mxu1 %vm369_vm2, %v1803_v63  ;;  %v1876_v63 = vld [vmem:[%s2785_s4 + $0x4] sm:$0xf] }
  0xb7   : > { %1475 = vperm.xlu1 %1958, %v1876_v63  }
  0xb9   : > { %v605_v4 = vpop.permute.xlu0 %604 }
  0xba   : > { %v607_v5 = vsel %vm606_vm5, %v603_v3, %v605_v4  ;;  %v608_v6 = vsel %vm606_vm5, %v605_v4, %v603_v3 }
  0xbb   : > { %v616_v7 = vmul.f32 %v612_v1, %v607_v5  ;;  %v617_v8 = vmul.f32 %v613_v2, %v608_v6 }
  0xbd   : > { %1815 = vmatpush.msk.msra.mxu0 %vm373_vm1, %v616_v7  ;;  %1817 = vmatpush.msk.msra.mxu1 %vm373_vm1, %v617_v8 }
  0xbe   : > { %1816 = vmatmul.msk.f32.vlgmr.msra.gmra.mxu0 %vm369_vm2, %v1814_v9  ;;  %1818 = vmatmul.msk.f32.vlgmr.msra.gmra.mxu1 %vm369_vm2, %v1814_v9 }
  0xc1   : > { %v679_v13 = vpop.permute.xlu1 %678  ;;  %v677_v14 = vpop.permute.xlu0 %676 }
  0xc2   : > { %v681_v15 = vsel %vm680_vm6, %v677_v14, %v679_v13  ;;  %v682_v16 = vsel %vm680_vm6, %v679_v13, %v677_v14  ;;  %v1048_v38 = vpop.permute.xlu2 %1047 }
  0xc3   : > { %v690_v17 = vmul.f32 %v686_v11, %v681_v15  ;;  %v691_v18 = vmul.f32 %v687_v12, %v682_v16  ;;  %v1851_v16 = vld [vmem:[%s2783_s2 + $0x8] sm:$0xf] }
  0xc5   : > { %1821 = vmatpush.msk.msra.mxu2 %vm373_vm1, %v690_v17  ;;  %1823 = vmatpush.msk.msra.mxu3 %vm373_vm1, %v691_v18  ;;  %v1039_v17 = vld [vmem:[%s2783_s2] sm:$0xf]  ;;  %v1879_v18 = vld [vmem:[%s2784_s3 + $0x24] sm:$0xf] }
  0xc6   : > { %1822 = vmatmul.msk.f32.vlgmr.msra.gmra.mxu2 %vm369_vm2, %v1820_v19  ;;  %1824 = vmatmul.msk.f32.vlgmr.msra.gmra.mxu3 %vm369_vm2, %v1820_v19  ;;  %v848_v19 = vld [vmem:[%s2784_s3] sm:$0xf] }
  0xc7   : > { %1534 = vperm.xlu1 %1958, %v1879_v18   ;;  %851 = vperm.xlu2 %1959, %v848_v19  }
  0xc9   : > { %v753_v26 = vpop.permute.xlu1 %752  ;;  %v751_v27 = vpop.permute.xlu0 %750 }
  0xca   : > { %v755_v28 = vsel %vm754_vm7, %v751_v27, %v753_v26  ;;  %v756_v30 = vsel %vm754_vm7, %v753_v26, %v751_v27  ;;  %v1159_v40 = vpop.permute.xlu2 %1158  ;;  %v1856_v26 = vld [vmem:[%s2783_s2 + $0xc] sm:$0xf] }
  0xcb   : > { %v764_v32 = vmul.f32 %v760_v23, %v755_v28  ;;  %v765_v36 = vmul.f32 %v2803_v24, %v756_v30  ;;  %v931_v28 = vperm.slane %v2457_v25, 0  ;;  %v1832_v30 = vld [vmem:[%s2784_s3 + $0x4] sm:$0xf] }
  0xcd   : > { %1827 = vmatpush.msk.msrb.mxu0 %vm373_vm1, %v764_v32  ;;  %1829 = vmatpush.msk.msrb.mxu1 %vm373_vm1, %v765_v36 }
  0xce   : > { %1828 = vmatmul.msk.f32.vlgmr.msrb.gmra.mxu0 %vm369_vm2, %v1826_v37  ;;  %1830 = vmatmul.msk.f32.vlgmr.msrb.gmra.mxu1 %vm369_vm2, %v1826_v37 }
  0xcf   : > { %876 = vperm.xlu2 %1959, %v1832_v30  }
  0xd2   : > { %v1034_v62 = vpop.permute.xlu2 %1033 }
  0xd9   : > { %v1046_v50 = vpop.permute.xlu1 %1045 }
  0xda   : > { %v1049_v51 = vsel %vm860_vm8, %v1046_v50, %v1048_v38  ;;  %v1050_v52 = vsel %vm860_vm8, %v1048_v38, %v1046_v50  ;;  %v1861_v50 = vld [vmem:[%s2783_s2 + $0x10] sm:$0xf] }
  0xdb   : > { %v1051_v53 = vmul.f32 %v1050_v52, %v866_v41  ;;  %v1052_v54 = vmul.f32 %v1049_v51, %v867_v42  ;;  %v2487_v51 = vld [vmem:[%s2787_s6 + $0x5] ss:$8 sm:$0x3] }
  0xdc   : > { %v958_v52 = vperm.slane %v2487_v51, 0 }
  0xdd   : > { %1843 = vmatpush.msk.msrb.mxu2 %vm373_vm1, %v1051_v53  ;;  %1845 = vmatpush.msk.msrb.mxu3 %vm373_vm1, %v1052_v54  ;;  %v959_v53 = vperm.slane %v2487_v51, 1 }
  0xde   : > { %1846 = vmatmul.msk.f32.vlgmr.msrb.gmra.mxu3 %vm369_vm2, %v1842_v55  ;;  %1844 = vmatmul.msk.f32.vlgmr.msrb.gmra.mxu2 %vm369_vm2, %v1842_v55  ;;  %v1839_v55 = vld [vmem:[%s2784_s3 + $0x14] sm:$0xf] }
  0xe1   : > { %v1161_v3 = vpop.permute.xlu0 %1160  ;;  %v1032_v4 = vpop.permute.xlu1 %1031 }
  0xe2   : > { %v1162_v5 = vsel %vm887_vm9, %v1159_v40, %v1161_v3  ;;  %v1163_v6 = vsel %vm887_vm9, %v1161_v3, %v1159_v40  ;;  %v1035_v7 = vsel %vm837_vm10, %v1032_v4, %v1034_v62  ;;  %v1036_v8 = vsel %vm837_vm10, %v1034_v62, %v1032_v4  ;;  %v1834_v62 = vld [vmem:[%s2784_s3 + $0x8] sm:$0xf] }
  0xe3   : > { %v1164_v9 = vmul.f32 %v1163_v6, %v893_v58  ;;  %v1165_v13 = vmul.f32 %v1162_v5, %v894_v59  ;;  %v1037_v14 = vmul.f32 %v1036_v8, %v842_v60  ;;  %v1038_v15 = vmul.f32 %v1035_v7, %v843_v61  ;;  %903 = vperm.xlu2 %1959, %v1834_v62   ;;  %v1866_v7 = vld [vmem:[%s2783_s2 + $0x14] sm:$0xf]  ;;  %v2516_v8 = vld [vmem:[%s2787_s6 + $0x6] ss:$8 sm:$0x3] }
  0xe5   : > { %1852 = vmatpush.msk.msra.mxu2 %vm373_vm1, %v1164_v9  ;;  %1854 = vmatpush.msk.msra.mxu3 %vm373_vm1, %v1165_v13  ;;  %v2802_v9 = vperm.slane %v2516_v8, 0  ;;  %v2801_v13 = vperm.slane %v2516_v8, 1 }
  0xe6   : > { %1849 = vmatpush.msk.msra.mxu1 %vm373_vm1, %v1038_v15  ;;  %1855 = vmatmul.msk.f32.vlgmr.msra.gmra.mxu3 %vm369_vm2, %v1851_v16 }
  0xe7   : > { %1850 = vmatmul.msk.f32.vlgmr.msra.gmra.mxu1 %vm369_vm2, %v1039_v17  ;;  %1847 = vmatpush.msk.msra.mxu0 %vm373_vm1, %v1037_v14  ;;  %v1877_v14 = vld [vmem:[%s2784_s3 + $0x1c] sm:$0xf] }
  0xe8   : > { %1853 = vmatmul.msk.f32.vlgmr.msra.gmra.mxu2 %vm369_vm2, %v1851_v16  ;;  %1848 = vmatmul.msk.f32.vlgmr.msra.gmra.mxu0 %vm369_vm2, %v1039_v17 }
  0xe9   : > { %1859 = vmatpush.msk.msrb.mxu1 %vm373_vm1, %v2201_v22  ;;  %1857 = vmatpush.msk.msrb.mxu0 %vm373_vm1, %v2199_v21  ;;  %v1411_v27 = vpop.permute.xlu2 %1410  ;;  %v932_v22 = vperm.slane %v2457_v25, 1  ;;  %v1837_v21 = vld [vmem:[%s2784_s3 + $0x10] sm:$0xf] }
  0xea   : > { %941 = vperm.xlu1 %1958, %v1837_v21  }
  0xeb   : > { %1498 = vperm.xlu2 %1959, %v1877_v14  }
  0xef   : > { %1860 = vmatmul.msk.f32.vlgmr.msrb.gmra.mxu1 %vm369_vm2, %v1856_v26 }
  0xf0   : > { %1858 = vmatmul.msk.f32.vlgmr.msrb.gmra.mxu0 %vm369_vm2, %v1856_v26  ;;  %v1871_v26 = vld [vmem:[%s2783_s2 + $0x18] sm:$0xf] }
  0xf1   : > { %v1281_v32 = vpop.permute.xlu1 %1280  ;;  %v1279_v36 = vpop.permute.xlu0 %1278 }
  0xf2   : > { %v1282_v37 = vsel %vm925_vm11, %v1279_v36, %v1281_v32  ;;  %v1283_v38 = vsel %vm925_vm11, %v1281_v32, %v1279_v36  ;;  %v1347_v54 = vpop.permute.xlu2 %1346  ;;  %968 = vperm.xlu1 %1958, %v1839_v55  }
  0xf3   : > { %v1284_v40 = vmul.f32 %v1282_v37, %v931_v28  ;;  %v1285_v45 = vmul.f32 %v1283_v38, %v932_v22  ;;  %v1881_v37 = vld [vmem:[%s2784_s3 + $0x2c] sm:$0xf] }
  0xf5   : > { %1864 = vmatpush.msk.msrb.mxu3 %vm373_vm1, %v1285_v45  ;;  %1862 = vmatpush.msk.msrb.mxu2 %vm373_vm1, %v1284_v40 }
  0xf6   : > { %1865 = vmatmul.msk.f32.vlgmr.msrb.gmra.mxu3 %vm369_vm2, %v1861_v50  ;;  %1863 = vmatmul.msk.f32.vlgmr.msrb.gmra.mxu2 %vm369_vm2, %v1861_v50 }
  0xf9   : > { %v1345_v63 = vpop.permute.xlu1 %1344 }
  0xfa   : > { %v1348_v3 = vsel %vm952_vm12, %v1345_v63, %v1347_v54  ;;  %v1349_v4 = vsel %vm952_vm12, %v1347_v54, %v1345_v63 }
  0xfb   : > { %v1350_v5 = vmul.f32 %v1348_v3, %v958_v52  ;;  %v1351_v6 = vmul.f32 %v1349_v4, %v959_v53 }
  0xfd   : > { %1869 = vmatpush.msk.msra.mxu1 %vm373_vm1, %v1351_v6  ;;  %1867 = vmatpush.msk.msra.mxu0 %vm373_vm1, %v1350_v5 }
  0xfe   : > { %1870 = vmatmul.msk.f32.vlgmr.msra.gmra.mxu1 %vm369_vm2, %v1866_v7  ;;  %1868 = vmatmul.msk.f32.vlgmr.msra.gmra.mxu0 %vm369_vm2, %v1866_v7 }
 0x101   : > { %v1413_v15 = vpop.permute.xlu0 %1412 }
 0x102   : > { %v1414_v16 = vsel %vm979_vm13, %v1411_v27, %v1413_v15  ;;  %v1415_v17 = vsel %vm979_vm13, %v1413_v15, %v1411_v27  ;;  %v1880_v27 = vld [vmem:[%s2784_s3 + $0x28] sm:$0xf] }
 0x103   : > { %v1416_v18 = vmul.f32 %v1414_v16, %v2802_v9  ;;  %v1417_v19 = vmul.f32 %v1415_v17, %v2801_v13  ;;  %1545 = vperm.xlu2 %1959, %v1880_v27  }
 0x105   : > { %1872 = vmatpush.msk.msra.mxu2 %vm373_vm1, %v1416_v18  ;;  %1874 = vmatpush.msk.msra.mxu3 %vm373_vm1, %v1417_v19 }
 0x106   : > { %1873 = vmatmul.msk.f32.vlgmr.msra.gmra.mxu2 %vm369_vm2, %v1871_v26  ;;  %1875 = vmatmul.msk.f32.vlgmr.msra.gmra.mxu3 %vm369_vm2, %v1871_v26 }
 0x109   : > { %v823_v15 = vpop.permute.xlu0 %822 }
 0x10b   : > { %1564 = vperm.xlu2 %1959, %v1881_v37  }
 0x129   : > { %v446_v32 = vpop.f32.mrf.mxu2  ;;  %v466_v36 = vpop.f32.mrf.mxu3 }
 0x12b   : > { %v397_v21 = vpop.f32.mrf.mxu0  ;;  %v417_v30 = vpop.f32.mrf.mxu1 }
 0x12c   : > { %v447_v45 = vadd.f32 %v446_v32, %v397_v21  ;;  %v467_v50 = vadd.f32 %v466_v36, %v417_v30 }
 0x132   : > { %v572_v62 = vpop.f32.mrf.mxu2 }
 0x133   : > { %v518_v38 = vpop.f32.mrf.mxu0  ;;  %v538_v40 = vpop.f32.mrf.mxu1 }
 0x134   : > { %v541_v54 = vadd.f32 %v518_v38, %v447_v45  ;;  %v542_v55 = vadd.f32 %v538_v40, %v467_v50  ;;  %v592_v63 = vpop.f32.mrf.mxu3  ;;  %v915_v40 = vpop.permute.xlu0 %914 }
 0x136   : > { %v595_v5 = vadd.f32 %v572_v62, %v541_v54  ;;  %v596_v6 = vadd.f32 %v592_v63, %v542_v55 }
 0x13b   : > { %v646_v3 = vpop.f32.mrf.mxu0  ;;  %v666_v4 = vpop.f32.mrf.mxu1 }
 0x13c   : > { %v669_v7 = vadd.f32 %v646_v3, %v595_v5  ;;  %v670_v14 = vadd.f32 %v666_v4, %v596_v6 }
 0x149   : > { %v720_v16 = vpop.f32.mrf.mxu2  ;;  %v740_v17 = vpop.f32.mrf.mxu3 }
 0x14a   : > { %v743_v18 = vadd.f32 %v720_v16, %v669_v7  ;;  %v744_v19 = vadd.f32 %v740_v17, %v670_v14 }
 0x14b   : > { %v794_v26 = vpop.f32.mrf.mxu0  ;;  %v814_v27 = vpop.f32.mrf.mxu1 }
 0x14c   : > { %v817_v37 = vadd.f32 %v794_v26, %v743_v18  ;;  %v818_v21 = vadd.f32 %v814_v27, %v744_v19 }
 0x14e   : > { %v825_v30 = vadd.f32 %v823_v15, %v817_v37  ;;  %v826_v32 = vadd.f32 %v823_v15, %v818_v21 }
 0x150   : > { %vm827_vm14 = vcmp.ge.f32.partialorder %v825_v30, 0.0  ;;  %v829_v36 = vmul.f32 0.02, %v825_v30  ;;  %vm828_vm15 = vcmp.ge.f32.partialorder %v826_v32, 0.0  ;;  %v830_v38 = vmul.f32 0.02, %v826_v32 }
 0x152   : > { %v831_v45 = vsel %vm827_vm14, %v825_v30, %v829_v36  ;;  %v832_v50 = vsel %vm828_vm15, %v826_v32, %v830_v38 }
 0x153   : > { %856 = vrot.lane.b32.xlu0 %v831_v45, %s2058_s19  ;;  %833 = vrot.lane.b32.xlu1 %v831_v45, %s2060_s22  ;;  %v2551_v54 = vmul.f32 %v915_v40, %v831_v45  ;;  %v2553_v55 = vmul.f32 %v915_v40, %v832_v50 }
 0x154   : > { %835 = vrot.lane.b32.xlu2 %v832_v50, %s2060_s22  ;;  %s2808_s22 = smov 96  }
 0x15b   : > { %883 = vrot.lane.b32.xlu0 %v831_v45, %s2059_s20  ;;  %858 = vrot.lane.b32.xlu1 %v832_v50, %s2058_s19  ;;  %s2806_s19 = smov 32  }
 0x15c   : > { %923 = vrot.lane.b32.xlu2 %v832_v50, %s2061_s23 }
 0x161   : > { %v1101_v62 = vpop.f32.mrf.mxu3  ;;  %v1081_v63 = vpop.f32.mrf.mxu2 }
 0x163   : > { %948 = vrot.lane.b32.xlu0 %v831_v45, %s2062_s24  ;;  %885 = vrot.lane.b32.xlu1 %v832_v50, %s2059_s20  ;;  %s2807_s20 = smov 16  }
 0x164   : > { %v1150_v3 = vpop.f32.mrf.mxu1 }
 0x165   : > { %v1130_v4 = vpop.f32.mrf.mxu0  ;;  %v1151_v14 = vadd.f32 %v1150_v3, %v1101_v62  ;;  %v1476_v3 = vpop.permute.xlu1 %1475 }
 0x166   : > { %v1131_v7 = vadd.f32 %v1130_v4, %v1081_v63 }
 0x169   : > { %v1214_v5 = vpop.f32.mrf.mxu3 }
 0x16a   : > { %v1218_v18 = vadd.f32 %v1214_v5, %v1151_v14 }
 0x16b   : > { %975 = vrot.lane.b32.xlu0 %v831_v45, %s2063_s25  ;;  %921 = vrot.lane.b32.xlu1 %v831_v45, %s2061_s23  ;;  %v1194_v6 = vpop.f32.mrf.mxu2  ;;  %s2809_s23 = smov 112  }
 0x16c   : > { %v1268_v15 = vpop.f32.mrf.mxu1  ;;  %v1217_v17 = vadd.f32 %v1194_v6, %v1131_v7 }
 0x16d   : > { %v1248_v16 = vpop.f32.mrf.mxu0  ;;  %v1272_v37 = vadd.f32 %v1268_v15, %v1218_v18 }
 0x16e   : > { %v1271_v19 = vadd.f32 %v1248_v16, %v1217_v17  ;;  %v1883_v16 = vld [vmem:[%s2784_s3 + $0x34] sm:$0xf]  ;;  %v2590_v17 = vpop.permute.xlu1 %1534 }
 0x173   : > { %950 = vrot.lane.b32.xlu1 %v832_v50, %s2062_s24 }
 0x179   : > { %v1334_v26 = vpop.f32.mrf.mxu3  ;;  %v1314_v27 = vpop.f32.mrf.mxu2 }
 0x17a   : > { %v1338_v21 = vadd.f32 %v1334_v26, %v1272_v37  ;;  %v1337_v30 = vadd.f32 %v1314_v27, %v1271_v19  ;;  %v1882_v19 = vld [vmem:[%s2784_s3 + $0x30] sm:$0xf]  ;;  %v942_v26 = vpop.permute.xlu1 %941  ;;  %v1841_v27 = vld [vmem:[%s2784_s3 + $0x18] sm:$0xf] }
 0x17b   : > { %977 = vrot.lane.b32.xlu1 %v832_v50, %s2063_s25  ;;  %v1400_v32 = vpop.f32.mrf.mxu1  ;;  %v1380_v36 = vpop.f32.mrf.mxu0  ;;  %s2810_s25 = smov 80  }
 0x17c   : > { %v1404_v38 = vadd.f32 %v1400_v32, %v1338_v21  ;;  %v1403_v40 = vadd.f32 %v1380_v36, %v1337_v30  ;;  %v2608_v32 = vpop.permute.xlu0 %1515 }
 0x182   : > { %v969_v21 = vpop.permute.xlu1 %968 }
 0x189   : > { %v1446_v45 = vpop.f32.mrf.mxu2  ;;  %v1466_v29 = vpop.f32.mrf.mxu3 }
 0x18a   : > { %v1469_v63 = vadd.f32 %v1446_v45, %v1403_v40  ;;  %v1470_v62 = vadd.f32 %v1466_v29, %v1404_v38  ;;  %v852_v29 = vpop.permute.xlu2 %851 }
 0x18c   : > { %v1478_v4 = vadd.f32 %v1476_v3, %v1469_v63  ;;  %v1479_v50 = vadd.f32 %v1476_v3, %v1470_v62 }
 0x18e   : > { %vm1480_vm2 = vcmp.ge.f32.partialorder %v1478_v4, 0.0  ;;  %v1482_v6 = vmul.f32 0.02, %v1478_v4  ;;  %vm1481_vm14 = vcmp.ge.f32.partialorder %v1479_v50, 0.0  ;;  %v1483_v5 = vmul.f32 0.02, %v1479_v50 }
 0x190   : > { %v2565_v7 = vsel %vm1480_vm2, %v1478_v4, %v1482_v6  ;;  %v2567_v14 = vsel %vm1481_vm14, %v1479_v50, %v1483_v5 }
 0x191   : > { %1486 = vrot.lane.b32.xlu2 %v2565_v7, %s2052_s10  ;;  %1488 = vrot.lane.b32.xlu0 %v2567_v14, %s2052_s10 }
 0x192   : > { %1503 = vrot.lane.b32.xlu1 %v2565_v7, %s2806_s19  ;;  %v877_v15 = vpop.permute.xlu2 %876 }
 0x199   : > { %1505 = vrot.lane.b32.xlu2 %v2567_v14, %s2806_s19  ;;  %1522 = vrot.lane.b32.xlu0 %v2565_v7, %s2807_s20  ;;  %s2732_s19 = sld [smem:[#allocation2 + $0x3]] }
 0x19a   : > { %1524 = vrot.lane.b32.xlu1 %v2567_v14, %s2807_s20  ;;  %v904_v18 = vpop.permute.xlu2 %903  ;;  %s1885_s20 = sld [smem:[#allocation2 + $0x2]] }
 0x1a1   : > { %1571 = vrot.lane.b32.xlu2 %v2565_v7, %s2808_s22  ;;  %1552 = vrot.lane.b32.xlu0 %v2565_v7, %s2809_s23 }
 0x1a2   : > { %1554 = vrot.lane.b32.xlu1 %v2567_v14, %s2809_s23  ;;  %v2604_v37 = vpop.permute.xlu2 %1498  ;;  %s311_s23 = sand.u32 1, %s2041_s28  }
 0x1a3   : > { %s2738_s10 = sshll.u32 %s311_s23, 1  ;;  %s1697_s21 = scalar_lea.sflag [#allocation3], %s311_s23 }
 0x1a4   : > { %s313_s26 = scalar_lea.vmem [#allocation5], %s2738_s10 }
 0x1a5   : > { %s1709_s9 = sshll.u32 %s313_s26, 4  ;;  %s1710_s9 = int_to_ptr.vmem [resolvable:$true] %s1709_s9 }
 0x1a9   : > { %1590 = vrot.lane.b32.xlu2 %v2565_v7, %s2810_s25  ;;  %1573 = vrot.lane.b32.xlu0 %v2567_v14, %s2808_s22  ;;  %s1887_s22 = sld [smem:[#allocation2 + $0x4]] }
 0x1aa   : > { %1602 = vperm.xlu1 %1958, %v1883_v16   ;;  %v2606_v30 = vpop.permute.xlu2 %1545 }
 0x1b1   : > { %1583 = vperm.xlu2 %1959, %v1882_v19   ;;  %1592 = vrot.lane.b32.xlu0 %v2567_v14, %s2810_s25 }
 0x1b2   : > { %v2610_v38 = vpop.permute.xlu2 %1564 }
 0x1b9   : > { %995 = vperm.xlu0 %1957, %v1841_v27  }
 0x1ba   : > { %v836_v63 = vpop.permute.xlu2 %835 }
 0x1c2   : > { %v924_v9 = vpop.permute.xlu2 %923 }
 0x1c5   : > { %v834_v36 = vpop.permute.xlu1 %833  ;;  %v857_v40 = vpop.permute.xlu0 %856 }
 0x1c6   : > { %v838_v6 = vsel %vm837_vm10, %v834_v36, %v836_v63  ;;  %v839_v5 = vsel %vm837_vm10, %v836_v63, %v834_v36 }
 0x1cd   : > { %v859_v45 = vpop.permute.xlu1 %858  ;;  %v884_v50 = vpop.permute.xlu0 %883 }
 0x1ce   : > { %v861_v3 = vsel %vm860_vm8, %v857_v40, %v859_v45  ;;  %v862_v4 = vsel %vm860_vm8, %v859_v45, %v857_v40  ;;  %v846_v40 = vmul.f32 %v842_v60, %v839_v5  ;;  %v847_v45 = vmul.f32 %v843_v61, %v838_v6 }
 0x1cf   : > { %v870_v27 = vmul.f32 %v866_v41, %v862_v4  ;;  %v871_v13 = vmul.f32 %v867_v42, %v861_v3 }
 0x1d0   : > { %v854_v42 = vmul.f32 %v852_v29, %v846_v40  ;;  %v855_v60 = vmul.f32 %v852_v29, %v847_v45 }
 0x1d5   : > { %v886_v62 = vpop.permute.xlu1 %885 }
 0x1d6   : > { %v888_v16 = vsel %vm887_vm9, %v884_v50, %v886_v62  ;;  %v889_v19 = vsel %vm887_vm9, %v886_v62, %v884_v50  ;;  %v879_v62 = vmul.f32 %v877_v15, %v870_v27  ;;  %v880_v50 = vmul.f32 %v877_v15, %v871_v13  ;;  %v949_v15 = vpop.permute.xlu0 %948 }
 0x1d7   : > { %v897_v36 = vmul.f32 %v893_v58, %v889_v19  ;;  %v898_v63 = vmul.f32 %v894_v59, %v888_v16 }
 0x1d8   : > { %v881_v3 = vadd.f32 %v879_v62, %v854_v42  ;;  %v882_v4 = vadd.f32 %v880_v50, %v855_v60 }
 0x1d9   : > { %v906_v57 = vmul.f32 %v904_v18, %v897_v36  ;;  %v907_v61 = vmul.f32 %v904_v18, %v898_v63 }
 0x1db   : > { %v908_v59 = vadd.f32 %v906_v57, %v881_v3  ;;  %v909_v13 = vadd.f32 %v907_v61, %v882_v4 }
 0x1dd   : > { %v922_v24 = vpop.permute.xlu1 %921  ;;  %v919_v25 = vadd.f32 %v2551_v54, %v908_v59 }
 0x1de   : > { %v926_v39 = vsel %vm925_vm11, %v922_v24, %v924_v9  ;;  %v927_v41 = vsel %vm925_vm11, %v924_v9, %v922_v24  ;;  %v976_v63 = vpop.permute.xlu0 %975 }
 0x1df   : > { %v935_v56 = vmul.f32 %v931_v28, %v926_v39  ;;  %v936_v58 = vmul.f32 %v932_v22, %v927_v41  ;;  %v920_v22 = vadd.f32 %v2553_v55, %v909_v13  ;;  %v1548_v13 = vmul.f32 %v2606_v30, %v2565_v7 }
 0x1e1   : > { %v944_v6 = vmul.f32 %v942_v26, %v935_v56  ;;  %v945_v5 = vmul.f32 %v942_v26, %v936_v58 }
 0x1e3   : > { %v946_v26 = vadd.f32 %v944_v6, %v919_v25  ;;  %v947_v27 = vadd.f32 %v945_v5, %v920_v22 }
 0x1e5   : > { %v951_v16 = vpop.permute.xlu1 %950 }
 0x1e6   : > { %v953_v24 = vsel %vm952_vm12, %v949_v15, %v951_v16  ;;  %v954_v9 = vsel %vm952_vm12, %v951_v16, %v949_v15  ;;  %v1549_v15 = vmul.f32 %v2606_v30, %v2567_v14  ;;  %vm1688_vm12 = vcmask 1040384  }
 0x1e7   : > { %v962_v29 = vmul.f32 %v958_v52, %v953_v24  ;;  %v963_v28 = vmul.f32 %v959_v53, %v954_v9 }
 0x1e9   : > { %v971_v18 = vmul.f32 %v969_v21, %v962_v29  ;;  %v972_v19 = vmul.f32 %v969_v21, %v963_v28 }
 0x1eb   : > { %v2654_v40 = vadd.f32 %v971_v18, %v946_v26  ;;  %v2656_v45 = vadd.f32 %v972_v19, %v947_v27  ;;  %v1487_v36 = vpop.permute.xlu2 %1486 }
 0x1ed   : > { %v978_v62 = vpop.permute.xlu1 %977 }
 0x1f3   : > { %v1506_v52 = vpop.permute.xlu2 %1505 }
 0x203   : > { %v1489_v50 = vpop.permute.xlu0 %1488 }
 0x204   : > { %v1504_v39 = vpop.permute.xlu1 %1503  ;;  %v1490_v51 = vsel %vm334_vm0, %v1487_v36, %v1489_v50  ;;  %v1491_v53 = vsel %vm334_vm0, %v1489_v50, %v1487_v36 }
 0x205   : > { %v1507_v54 = vsel %vm355_vm4, %v1504_v39, %v1506_v52  ;;  %v1508_v55 = vsel %vm355_vm4, %v1506_v52, %v1504_v39  ;;  %v1492_v21 = vmul.f32 %v1491_v53, %v339_v34  ;;  %v1493_v41 = vmul.f32 %v1490_v51, %v340_v35  ;;  %v1572_v35 = vpop.permute.xlu2 %1571 }
 0x206   : > { %v1509_v42 = vmul.f32 %v1508_v55, %v361_v46  ;;  %v1510_v60 = vmul.f32 %v1507_v54, %v362_v48  ;;  %v981_v39 = vsel %vm979_vm13, %v978_v62, %v976_v63 }
 0x207   : > { %v1501_v61 = vmul.f32 %v2604_v37, %v1492_v21  ;;  %v1502_v3 = vmul.f32 %v2604_v37, %v1493_v41 }
 0x208   : > { %v1518_v4 = vmul.f32 %v2608_v32, %v1509_v42  ;;  %v1519_v56 = vmul.f32 %v2608_v32, %v1510_v60  ;;  %v2812_v60 = vperm.slane %v2516_v8, 0 }
 0x20a   : > { %v1520_v48 = vadd.f32 %v1518_v4, %v1501_v61  ;;  %v1521_v37 = vadd.f32 %v1519_v56, %v1502_v3 }
 0x20b   : > { %v1523_v57 = vpop.permute.xlu0 %1522 }
 0x20c   : > { %v1525_v58 = vpop.permute.xlu1 %1524 }
 0x20d   : > { %v1526_v33 = vsel %vm478_vm3, %v1523_v57, %v1525_v58  ;;  %v1527_v34 = vsel %vm478_vm3, %v1525_v58, %v1523_v57  ;;  %v1591_v44 = vpop.permute.xlu2 %1590 }
 0x20e   : > { %v1528_v43 = vmul.f32 %v1527_v34, %v484_v47  ;;  %v1529_v46 = vmul.f32 %v1526_v33, %v485_v49 }
 0x210   : > { %v1537_v59 = vmul.f32 %v2590_v17, %v1528_v43  ;;  %v1538_v32 = vmul.f32 %v2590_v17, %v1529_v46 }
 0x212   : > { %v1539_v6 = vadd.f32 %v1537_v59, %v1520_v48  ;;  %v1540_v5 = vadd.f32 %v1538_v32, %v1521_v37 }
 0x213   : > { %v1553_v16 = vpop.permute.xlu0 %1552 }
 0x214   : > { %v1550_v24 = vadd.f32 %v1548_v13, %v1539_v6  ;;  %v1551_v47 = vadd.f32 %v1549_v15, %v1540_v5  ;;  %v1555_v9 = vpop.permute.xlu1 %1554 }
 0x215   : > { %v1556_v49 = vsel %vm606_vm5, %v1553_v16, %v1555_v9  ;;  %v1557_v29 = vsel %vm606_vm5, %v1555_v9, %v1553_v16  ;;  %v1584_v26 = vpop.permute.xlu2 %1583 }
 0x216   : > { %v1558_v30 = vmul.f32 %v1556_v49, %v612_v1  ;;  %v1559_v28 = vmul.f32 %v1557_v29, %v613_v2 }
 0x218   : > { %v1567_v18 = vmul.f32 %v2610_v38, %v1558_v30  ;;  %v1568_v19 = vmul.f32 %v2610_v38, %v1559_v28  ;;  %v980_v38 = vsel %vm979_vm13, %v976_v63, %v978_v62 }
 0x219   : > { %v989_v57 = vmul.f32 %v2812_v60, %v980_v38 }
 0x21a   : > { %v1569_v2 = vadd.f32 %v1567_v18, %v1550_v24  ;;  %v1570_v52 = vadd.f32 %v1568_v19, %v1551_v47  ;;  %v1624_v24 = vstv %s1884_s13  ;;  %s1997_s13 = sshra.s32 %s1712_s12, 4  ;;  %s1998_s13 = int_to_ptr.hbm [resolvable:$true] %s1997_s13 }
 0x21b   : > { %v1574_v17 = vpop.permute.xlu0 %1573  ;;  %p2004_p3 = scmp.lt.s32.totalorder %s1998_s13, %s2789_s8 }
 0x21c   : > { %v1575_v7 = vsel %vm680_vm6, %v1572_v35, %v1574_v17  ;;  %v1576_v14 = vsel %vm680_vm6, %v1574_v17, %v1572_v35  ;;  %v1603_v51 = vpop.permute.xlu1 %1602 }
 0x21d   : > { %v1577_v25 = vmul.f32 %v1575_v7, %v686_v11  ;;  %v1578_v22 = vmul.f32 %v1576_v14, %v687_v12  ;;  %v2811_v11 = vperm.slane %v2342_v20, 1 }
 0x21f   : > { %v1586_v27 = vmul.f32 %v1584_v26, %v1577_v25  ;;  %v1587_v36 = vmul.f32 %v1584_v26, %v1578_v22  ;;  %v1017_v25 = vstv %s1016_s17  ;;  %s1999_s17 = scalar_lea.hbm %s1998_s13, 2 }
 0x220   : > { %p2000_p0 = scmp.ne.s32.totalorder %s1998_s13, %s1999_s17 }
 0x221   : > { %v1588_v53 = vadd.f32 %v1586_v27, %v1569_v2  ;;  %v1589_v54 = vadd.f32 %v1587_v36, %v1570_v52 }
 0x222   : > { %p2001_p1 = pnand %p2000_p0, %p2145_p5 }
 0x223   : > { %v1593_v50 = vpop.permute.xlu0 %1592 }
 0x224   : > { %v1594_v1 = vsel %vm754_vm7, %v1591_v44, %v1593_v50  ;;  %v1595_v0 = vsel %vm754_vm7, %v1593_v50, %v1591_v44  ;;  %v1634_v50 = vstv %s1885_s20  ;;  %p2002_p2 = pneg %p2001_p1 }
 0x225   : > { %v1596_v10 = vmul.f32 %v1594_v1, %v760_v23  ;;  %v1597_v12 = vmul.f32 %v1595_v0, %v2811_v11  ;;  %v2813_v23 = vperm.slane %v2516_v8, 1  ;;  %v1638_v1 = vstv %s2732_s19 }
 0x227   : > { %v1605_v55 = vmul.f32 %v1603_v51, %v1596_v10  ;;  %v1606_v21 = vmul.f32 %v1603_v51, %v1597_v12  ;;  %v990_v20 = vmul.f32 %v2813_v23, %v981_v39  ;;  %v1644_v51 = vstv %s1887_s22  ;;  %s2003_s22 = scalar_lea.hbm %s2789_s8, 4 }
 0x228   : > { %p2005_p4 = scmp.lt.s32.totalorder %s2003_s22, %s1999_s17 }
 0x229   : > { %v1607_v41 = vadd.f32 %v1605_v55, %v1588_v53  ;;  %v1608_v42 = vadd.f32 %v1606_v21, %v1589_v54 }
 0x22a   : > { %p2006_p7 = por %p2005_p4, %p2004_p3 }
 0x22b   : > { %v1609_v61 = vsel %vm373_vm1, %v1607_v41, 0.0  ;;  %v1616_v3 = vsel %vm373_vm1, %v1608_v42, 0.0  ;;  %v996_v4 = vpop.permute.xlu0 %995 }
 0x22c   : > { %v1610_v31 = vrot.slane %v1609_v61, 4  ;;  %v1617_v63 = vrot.slane %v1616_v3, 4  ;;  %v998_v62 = vmul.f32 %v996_v4, %v989_v57  ;;  %v999_v56 = vmul.f32 %v996_v4, %v990_v20  ;;  %p2007_p8 = pnand %p2006_p7, %p2002_p2 }
 0x22e   : > { %v1611_v58 = vadd.f32 %v1610_v31, %v1609_v61  ;;  %v1618_v33 = vadd.f32 %v1617_v63, %v1616_v3  ;;  %v1000_v34 = vadd.f32 %v998_v62, %v2654_v40  ;;  %v1001_v35 = vadd.f32 %v999_v56, %v2656_v45 }
 0x230   : > { %v1612_v43 = vrot.slane %v1611_v58, 2  ;;  %v1619_v46 = vrot.slane %v1618_v33, 2  ;;  %v1002_v8 = vsel %vm373_vm1, %v1000_v34, 0.0  ;;  %v1009_v48 = vsel %vm373_vm1, %v1001_v35, 0.0 }
 0x231   : > { %v1003_v37 = vrot.slane %v1002_v8, 4  ;;  %v1010_v59 = vrot.slane %v1009_v48, 4 }
 0x232   : > { %v1613_v32 = vadd.f32 %v1612_v43, %v1611_v58  ;;  %v1620_v13 = vadd.f32 %v1619_v46, %v1618_v33 }
 0x233   : > { %v1004_v15 = vadd.f32 %v1003_v37, %v1002_v8  ;;  %v1011_v6 = vadd.f32 %v1010_v59, %v1009_v48 }
 0x234   : > { %v1614_v5 = vrot.slane %v1613_v32, 1  ;;  %v1621_v16 = vrot.slane %v1620_v13, 1 }
 0x235   : > { %v1005_v40 = vrot.slane %v1004_v15, 2  ;;  %v1012_v45 = vrot.slane %v1011_v6, 2 }
 0x236   : > { %v1615_v47 = vadd.f32 %v1614_v5, %v1613_v32  ;;  %v1622_v9 = vadd.f32 %v1621_v16, %v1620_v13  ;;  %v2816_v5 = vlaneseq }
 0x237   : > { %v1006_v44 = vadd.f32 %v1005_v40, %v1004_v15  ;;  %v1013_v49 = vadd.f32 %v1012_v45, %v1011_v6 }
 0x238   : > { %v1625_v29 = vadd.f32 %v1624_v24, %v1615_v47  ;;  %v1626_v17 = vadd.f32 %v1624_v24, %v1622_v9  ;;  %vm1693_vm15 = vcmp.lt.s32.totalorder %v2816_v5, 256 }
 0x239   : > { %v1007_v7 = vrot.slane %v1006_v44, 1  ;;  %v1014_v14 = vrot.slane %v1013_v49, 1 }
 0x23a   : > { %v1629_v30 = vmul.f32 0.02, %v1625_v29  ;;  %v1630_v28 = vmul.f32 0.02, %v1626_v17  ;;  %vm1627_vm0 = vcmp.ge.f32.partialorder %v1625_v29, 0.0  ;;  %vm1628_vm1 = vcmp.ge.f32.partialorder %v1626_v17, 0.0 }
 0x23b   : > { %v1008_v22 = vadd.f32 %v1007_v7, %v1006_v44  ;;  %v1015_v18 = vadd.f32 %v1014_v14, %v1013_v49 }
 0x23c   : > { %v1631_v27 = vsel %vm1627_vm0, %v1625_v29, %v1629_v30  ;;  %v1632_v36 = vsel %vm1628_vm1, %v1626_v17, %v1630_v28 }
 0x23d   : > { %v1018_v19 = vadd.f32 %v1017_v25, %v1008_v22  ;;  %v1019_v26 = vadd.f32 %v1017_v25, %v1015_v18  ;;  %v1639_v38 = vmul.f32 %v1638_v1, %v1631_v27  ;;  %v1640_v39 = vmul.f32 %v1638_v1, %v1632_v36 }
 0x23f   : > { %vm1020_vm3 = vcmp.ge.f32.partialorder %v1018_v19, 0.0  ;;  %vm1021_vm4 = vcmp.ge.f32.partialorder %v1019_v26, 0.0  ;;  %v1022_v0 = vmul.f32 0.02, %v1018_v19  ;;  %v1023_v2 = vmul.f32 0.02, %v1019_v26 }
 0x241   : > { %v1024_v52 = vsel %vm1020_vm3, %v1018_v19, %v1022_v0  ;;  %v1025_v10 = vsel %vm1021_vm4, %v1019_v26, %v1023_v2 }
 0x242   : > { %v1635_v11 = vmul.f32 %v1634_v50, %v1024_v52  ;;  %v1636_v12 = vmul.f32 %v1634_v50, %v1025_v10 }
 0x244   : > { %v1641_v53 = vadd.f32 %v1639_v38, %v1635_v11  ;;  %v1642_v54 = vadd.f32 %v1640_v39, %v1636_v12 }
 0x246   : > { %v1645_v55 = vadd.f32 %v1644_v51, %v1641_v53  ;;  %v1646_v21 = vadd.f32 %v1644_v51, %v1642_v54 }
 0x248   : > { %v1888_v41 = vmul.f32 -1.442695, %v1645_v55  ;;  %v1889_v42 = vmul.f32 -1.442695, %v1646_v21 }
 0x24a   : > { %1960 = vpow2.f32 %v1888_v41 }
 0x24b   : > { %1962 = vpow2.f32 %v1889_v42 }
 0x250   : > { %v1961_v60 = vpop.eup %1960 }
 0x251   : > { %v1963_v57 = vpop.eup %1962  ;;  %v1653_v23 = vadd.f32 1.0, %v1961_v60 }
 0x252   : > { %v1654_v20 = vadd.f32 1.0, %v1963_v57 }
 0x253   : > { %1964 = vrcp.f32 %v1653_v23  ;;  %vm1660_vm7 = vweird.f32 %v1653_v23  ;;  %v1666_v43 = vand.u32 2147483648, %v1653_v23  ;;  %v1664_v8 = vand.u32 2147483647, %v1653_v23 }
 0x254   : > { %1966 = vrcp.f32 %v1654_v20  ;;  %v1681_v58 = vand.u32 2147483648, %v1654_v20  ;;  %v1679_v34 = vand.u32 2147483647, %v1654_v20  ;;  %vm1675_vm9 = vweird.f32 %v1654_v20 }
 0x255   : > { %v1667_v13 = vor.u32 1.1754944e-38, %v1666_v43  ;;  %vm1665_vm13 = vcmp.eq.f32.partialorder %v1664_v8, 8.507059e+37 }
 0x256   : > { %v1682_v37 = vor.u32 1.1754944e-38, %v1681_v58  ;;  %vm1680_vm11 = vcmp.eq.f32.partialorder %v1679_v34, 8.507059e+37 }
 0x259   : > { %v1965_v61 = vpop.eup %1964 }
 0x25a   : > { %v1967_v3 = vpop.eup %1966  ;;  %v1656_v4 = vmul.f32 %v1965_v61, %v1653_v23  ;;  %vm1661_vm5 = vweird.f32 %v1965_v61 }
 0x25b   : > { %v1671_v31 = vmul.f32 %v1967_v3, %v1654_v20  ;;  %vm1676_vm6 = vweird.f32 %v1967_v3  ;;  %vm2744_vm8 = vmor %vm1660_vm7, %vm1661_vm5 }
 0x25c   : > { %v1657_v63 = vsub.f32 1.0, %v1656_v4  ;;  %vm1677_vm10 = vmor %vm1675_vm9, %vm1676_vm6 }
 0x25d   : > { %v1672_v62 = vsub.f32 1.0, %v1671_v31 }
 0x25e   : > { %v1658_v56 = vmul.f32 %v1965_v61, %v1657_v63 }
 0x25f   : > { %v1673_v33 = vmul.f32 %v1967_v3, %v1672_v62 }
 0x260   : > { %v1659_v35 = vadd.f32 %v1965_v61, %v1658_v56 }
 0x261   : > { %v1674_v48 = vadd.f32 %v1967_v3, %v1673_v33 }
 0x262   : > { %v1663_v59 = vsel %vm2744_vm8, %v1965_v61, %v1659_v35 }
 0x263   : > { %v1678_v32 = vsel %vm1677_vm10, %v1967_v3, %v1674_v48  ;;  %v1668_v16 = vsel %vm1665_vm13, %v1667_v13, %v1663_v59 }
 0x264   : > { %v1683_v15 = vsel %vm1680_vm11, %v1682_v37, %v1678_v32 }
 0x265   : > { %v1687_v6 = vrot.slane %v1683_v15, 7 }
 0x267   : > { %v1689_v24 = vsel %vm1688_vm12, %v1668_v16, %v1687_v6 }
 0x268   : > { %1695 = vst.msk [vmem:[%s313_s26] sm:$0x3] %vm1693_vm15, %v1689_v24 }
 0x269   : > { %2010 = shalt.err (!%p2007_p8)
}
 0x26a   : > { %1898 = dma.vmem_to_hbm [thread:$0]  (%p2145_p5), %s1710_s9, 32, %s1712_s12, %s1697_s21  }
 0x26b PF: > { %p1910_p9 = scmp.ge.s32.totalorder %s2049_s30, 2  ;;  %s1723_s23 = sand.u32 1, %s2037_s27  }
 0x26c   : > { %s1724_s25 = scalar_lea.sflag [#allocation3], %s1723_s23 }
 0x26d   : > { %p1905_p10 = pnand %p1910_p9, %p2149_p6 }
 0x26f   : > { %p1906_p11 = pneg %p1905_p10 }
 0x271   : > { %2032 = dma.done.wait (%p1906_p11), %s1724_s25, 32  }
 0x272   : > { %2034 = vsyncadd (%p1906_p11), %s1724_s25, 4294967264  ;;  %p19_p12 = scmp.ge.s32.totalorder %s2133_s11, 4   ;;  %s2817_s27 = smov %s2041_s28 }
 0x273   : > { %s2818_s28 = smov %s2045_s29  ;;  %s2819_s29 = smov %s2143_s14 }
 0x274   : > { %s2820_s30 = smov %s2133_s11  ;;  %21 = sbr.rel (!%p19_p12) target bundleno = 4 (0x4), region = 128 }
 0x279   :  { %1730 = vsyncpa [#allocation3], 1 }
 0x27a   :  { %1732 = vsyncpa [#allocation3 + $0x1], 1 }
 0x27b   :  { %1733 = vsyncpa [#allocation4], 1 }
 0x27c   :  { %1735 = vsyncpa [#allocation4 + $0x1], 1 }

</bundles_post_ra>
